<compile_context>
chip_gen: v7x
topology: tpu7x:2x2x1
jax: 0.10.0
libtpu: 0.0.40
codegen_flags: <defaults>
</compile_context>

<pallas_src>
import functools
import math

import jax
import jax.numpy as jnp
from jax.experimental import pallas as pl
from jax.experimental.pallas import tpu as pltpu


# ----------------------------- small helpers -------------------------------

def _layer_norm(x, g, b, eps=1e-5):
    mu = jnp.mean(x, axis=-1, keepdims=True)
    var = jnp.mean((x - mu) ** 2, axis=-1, keepdims=True)
    return (x - mu) * jax.lax.rsqrt(var + eps) * g + b


def _round_up(n, m):
    return ((n + m - 1) // m) * m


def _pick_tile(n, candidates=(2048, 1024, 512, 256, 128)):
    """Largest lane-dense tile dividing n (n is pre-padded to a 128-multiple)."""
    for c in candidates:
        if n % c == 0:
            return c
    return n


def _nbytes(a):
    return int(a.size) * jnp.dtype(a.dtype).itemsize


def _vmem_limit(per_step_bytes):
    """Generation-aware scoped-VMEM request: double-buffered working set +
    headroom, capped at ~85% of the physical per-core VMEM (128 MiB on
    v5e/v6e, 64 MiB on v7x)."""
    try:
        cap = int(pltpu.get_tpu_info().vmem_capacity_bytes)
    except Exception:  # pragma: no cover - conservative fallback
        cap = 64 << 20
    want = 2 * per_step_bytes + (8 << 20)
    return int(min(int(cap * 0.85), max(32 << 20, want)))


# ------------------------- decoder stack kernel ----------------------------

def decoder_stack_kernel(n_heads, seq_len,
                         x_ref, wqkv_ref, bqkv_ref, wo_ref,
                         w1_ref, b1_ref, w2_ref, pack_ref, out_ref):
    layer = pl.program_id(0)

    # Seed the resident residual stream with the embeddings at the first layer.
    @pl.when(layer == 0)
    def _():
        out_ref[...] = x_ref[...]

    M, D = out_ref.shape                     # M = B * S
    S = seq_len
    B = M // S
    H = n_heads
    hd = D // H
    scale = 1.0 / math.sqrt(hd)

    # Packed per-layer small params: rows [bo, ln1g, ln1b, ln2g, ln2b, b2, ln3g, ln3b]
    pack = pack_ref[0]                       # (8, D) f32
    bo, b2 = pack[0:1], pack[5:6]
    ln1g, ln1b = pack[1:2], pack[2:3]
    ln2g, ln2b = pack[3:4], pack[4:5]
    ln3g, ln3b = pack[6:7], pack[7:8]
    bqkv = bqkv_ref[0]                       # (1, 3D) f32
    b1 = b1_ref[0]                           # (1, F)  f32

    # Causal additive mask built in-kernel (cheap iota/compare, no VMEM residency).
    row = jax.lax.broadcasted_iota(jnp.int32, (S, S), 0)
    col = jax.lax.broadcasted_iota(jnp.int32, (S, S), 1)
    mask = jnp.where(col <= row, 0.0, -1e9).astype(jnp.float32)

    h = out_ref[...].astype(jnp.float32)     # (B*S, D) residual stream

    # --- fused QKV: one lane-dense matmul -----------------------------------
    qkv = jnp.dot(h.astype(jnp.bfloat16), wqkv_ref[0],
                  preferred_element_type=jnp.float32) + bqkv        # (B*S, 3D)
    q = (qkv[:, :D] * scale).astype(jnp.bfloat16)                   # fold 1/sqrt(hd)
    k = qkv[:, D:2 * D].astype(jnp.bfloat16)
    v = qkv[:, 2 * D:].astype(jnp.bfloat16)

    # --- attention (per batch/head scores are inherent; static unroll at toy
    #     shapes).  Softmax in f32 (v5e-safe; on v6e/v7x bf16 exp would also work).
    ctx_rows = []
    for b in range(B):
        r0, r1 = b * S, (b + 1) * S
        head_ctx = []
        for hh in range(H):
            c0, c1 = hh * hd, (hh + 1) * hd
            s = jnp.einsum('qd,kd->qk', q[r0:r1, c0:c1], k[r0:r1, c0:c1],
                           preferred_element_type=jnp.float32) + mask
            s = s - jnp.max(s, axis=-1, keepdims=True)
            p = jnp.exp(s)
            denom = jnp.sum(p, axis=-1, keepdims=True)
            o = jnp.dot(p.astype(jnp.bfloat16), v[r0:r1, c0:c1],
                        preferred_element_type=jnp.float32)         # (S, hd)
            # deferred normalization (EUP reciprocal, approx)
            head_ctx.append(o * pl.reciprocal(denom, approx=True))
        ctx_rows.append(jnp.concatenate(head_ctx, axis=-1))          # (S, D)
    ctx = jnp.concatenate(ctx_rows, axis=0)                          # (B*S, D)

    # --- fused output projection: single (B*S, D) @ (D, D) matmul -----------
    attn = jnp.dot(ctx.astype(jnp.bfloat16), wo_ref[0],
                   preferred_element_type=jnp.float32) + bo

    # --- post-norm residual stack (PyTorch TransformerDecoderLayer default) --
    h = _layer_norm(h + attn, ln1g, ln1b)
    h = _layer_norm(h, ln2g, ln2b)           # cross-attn skipped (memory=None)

    ff = jnp.maximum(
        jnp.dot(h.astype(jnp.bfloat16), w1_ref[0],
                preferred_element_type=jnp.float32) + b1, 0.0)
    ff = jnp.dot(ff.astype(jnp.bfloat16), w2_ref[0],
                 preferred_element_type=jnp.float32) + b2
    h = _layer_norm(h + ff, ln3g, ln3b)

    out_ref[...] = h.astype(out_ref.dtype)


def run_decoder_stack(x2d, blk, n_heads, seq_len):
    M, D = x2d.shape                         # M = B * S
    B = M // seq_len
    L = blk['wqkv'].shape[0]
    F = blk['w1'].shape[-1]
    H = n_heads

    def wspec(*shape):
        return pl.BlockSpec((1,) + shape,
                            lambda l, _nd=len(shape): (l,) + (0,) * _nd)

    in_specs = [
        pl.BlockSpec((M, D), lambda l: (0, 0)),   # embeddings (resident)
        wspec(D, 3 * D),                          # wqkv
        wspec(1, 3 * D),                          # bqkv
        wspec(D, D),                              # wo
        wspec(D, F),                              # w1
        wspec(1, F),                              # b1
        wspec(F, D),                              # w2
        wspec(8, D),                              # packed bo/b2/LN params
    ]
    out_spec = pl.BlockSpec((M, D), lambda l: (0, 0))   # resident residual stream

    # Per-step working set: one layer's weights + activation blocks + the f32
    # intermediates (scores, qkv, contexts, FFN activations, residual copies).
    w_bytes = sum(_nbytes(a) for a in blk.values()) // L
    inter = 4 * (B * H * seq_len * seq_len + M * 3 * D + M * F + 5 * M * D)
    per_step = w_bytes + 2 * (M * D * 2) + inter

    return pl.pallas_call(
        functools.partial(decoder_stack_kernel, n_heads, seq_len),
        out_shape=jax.ShapeDtypeStruct((M, D), jnp.bfloat16),
        grid=(L,),
        in_specs=in_specs,
        out_specs=out_spec,
        compiler_params=pltpu.CompilerParams(
            dimension_semantics=("arbitrary",),
            vmem_limit_bytes=_vmem_limit(per_step)),
    )(x2d, blk['wqkv'], blk['bqkv'], blk['wo'],
      blk['w1'], blk['b1'], blk['w2'], blk['pack'])


# ----------------------------- lm-head kernel ------------------------------

def lm_head_kernel(x_ref, w_ref, b_ref, out_ref):
    y = jnp.dot(x_ref[...], w_ref[...], preferred_element_type=jnp.float32)
    out_ref[...] = (y + b_ref[...]).astype(out_ref.dtype)


def run_lm_head(x2d, w_out, b_out):
    M, D = x2d.shape
    Vp = w_out.shape[-1]                     # padded vocab (multiple of 128)
    tv = _pick_tile(Vp)                      # lane-dense vocab tile
    per_step = M * D * 2 + D * tv * 2 + tv * 4 + 2 * M * tv * 4

    return pl.pallas_call(
        lm_head_kernel,
        out_shape=jax.ShapeDtypeStruct((M, Vp), jnp.float32),
        grid=(Vp // tv,),
        in_specs=[
            pl.BlockSpec((M, D), lambda v: (0, 0)),    # activations resident
            pl.BlockSpec((D, tv), lambda v: (0, v)),   # each weight tile streamed once
            pl.BlockSpec((1, tv), lambda v: (0, v)),
        ],
        out_specs=pl.BlockSpec((M, tv), lambda v: (0, v)),
        compiler_params=pltpu.CompilerParams(
            dimension_semantics=("parallel",),
            vmem_limit_bytes=_vmem_limit(per_step)),
    )(x2d, w_out, b_out)


# ------------------------------ forward pass --------------------------------

def gpt_forward(tokens, causal_mask, params, n_heads):
    # TODO(synk): the kernel regenerates the strictly-causal additive mask
    # in-kernel (iota + where); an arbitrary tgt_mask value is not honored.
    del causal_mask
    B, S = tokens.shape
    V = params['embed'].shape[0]
    # token + positional embedding (plain JAX gather); dropout = identity
    x = (jnp.take(params['embed'], tokens, axis=0)
         + params['pos'][0, :S, :]).astype(jnp.bfloat16)
    h = run_decoder_stack(x.reshape(B * S, -1), params['blocks'], n_heads, S)
    logits = run_lm_head(h, params['w_out'], params['b_out'])
    return logits.reshape(B, S, -1)[:, :, :V]


# ------------------------------- param init --------------------------------

def init_params(key, vocab_size, seq_length, d_model, n_heads, n_layers,
                d_ff=2048):
    L = n_layers
    Vp = _round_up(vocab_size, 128)          # lane-dense padded vocab
    ks = iter(jax.random.split(key, 8))
    f32, bf16 = jnp.float32, jnp.bfloat16

    def rnd(shape):
        return 0.02 * jax.random.normal(next(ks), shape, dtype=f32)

    ones_d = jnp.ones((L, 1, d_model), f32)
    zeros_d = jnp.zeros((L, 1, d_model), f32)
    # packed per-layer small params: rows [bo, ln1g, ln1b, ln2g, ln2b, b2, ln3g, ln3b]
    pack = jnp.concatenate(
        [zeros_d, ones_d, zeros_d, ones_d, zeros_d, zeros_d, ones_d, zeros_d],
        axis=1)

    w_out = jnp.zeros((d_model, Vp), f32)
    w_out = w_out.at[:, :vocab_size].set(rnd((d_model, vocab_size)))

    # Matmul weights stored bf16 (f32 MXU accumulation in-kernel); biases and
    # LayerNorm params stay f32.  QKV columns: [0:D]=Q, [D:2D]=K, [2D:3D]=V,
    # head-major within each; Wo rows are head-major (matches concat order).
    params = {
        'embed': jax.random.normal(next(ks), (vocab_size, d_model), dtype=f32),
        'pos': jnp.zeros((1, seq_length, d_model), f32),
        'w_out': w_out.astype(bf16),
        'b_out': jnp.zeros((1, Vp), f32),
        'blocks': {
            'wqkv': rnd((L, d_model, 3 * d_model)).astype(bf16),
            'bqkv': jnp.zeros((L, 1, 3 * d_model), f32),
            'wo':   rnd((L, d_model, d_model)).astype(bf16),
            'w1':   rnd((L, d_model, d_ff)).astype(bf16),
            'b1':   jnp.zeros((L, 1, d_ff), f32),
            'w2':   rnd((L, d_ff, d_model)).astype(bf16),
            'pack': pack,
        },
    }
    return params


# ---------------------------------- main ------------------------------------

if __name__ == "__main__":
    vocab_size, seq_length, d_model, n_heads, n_layers = 64, 8, 32, 4, 2
    batch = 2

    key = jax.random.PRNGKey(0)
    k_tok, k_par = jax.random.split(key)

    params = init_params(k_par, vocab_size, seq_length, d_model, n_heads,
                         n_layers)

    tokens = jax.random.randint(k_tok, (batch, seq_length), 0, vocab_size,
                                dtype=jnp.int32)
    # additive causal mask (API parity with the PyTorch forward): 0 on/below
    # the diagonal, large negative above.
    row = jnp.arange(seq_length)[:, None]
    col = jnp.arange(seq_length)[None, :]
    causal_mask = jnp.where(col <= row, 0.0, -1e9).astype(jnp.float32)

    logits = gpt_forward(tokens, causal_mask, params, n_heads)
    logits = jax.block_until_ready(logits)

    assert logits.shape == (batch, seq_length, vocab_size)
    assert bool(jnp.all(jnp.isfinite(logits)))
    print("KERNEL_OK")
</pallas_src>

<mosaic_0001>
module attributes {stable_mosaic.version = 11 : i64} {
  func.func @decoder_stack_kernel(%arg0: i32, %arg1: memref<16x32xbf16, #tpu.memory_space<vmem>>, %arg2: memref<1x32x96xbf16, #tpu.memory_space<vmem>>, %arg3: memref<1x1x96xf32, #tpu.memory_space<vmem>>, %arg4: memref<1x32x32xbf16, #tpu.memory_space<vmem>>, %arg5: memref<1x32x2048xbf16, #tpu.memory_space<vmem>>, %arg6: memref<1x1x2048xf32, #tpu.memory_space<vmem>>, %arg7: memref<1x2048x32xbf16, #tpu.memory_space<vmem>>, %arg8: memref<1x8x32xf32, #tpu.memory_space<vmem>>, %arg9: memref<16x32xbf16, #tpu.memory_space<vmem>>) attributes {dimension_semantics = [#tpu.dimension_semantics<arbitrary>], iteration_bounds = array<i64: 2>, scalar_prefetch = 0 : i64, scratch_operands = 0 : i64, tpu.core_type = #tpu.core_type<tc>, window_params = [{pipeline_mode = #tpu.pipeline_mode<synchronous>, transform_indices = @transform_0, window_bounds = array<i64: 16, 32>}, {transform_indices = @transform_1, window_bounds = array<i64: 1, 32, 96>}, {transform_indices = @transform_2, window_bounds = array<i64: 1, 1, 96>}, {transform_indices = @transform_3, window_bounds = array<i64: 1, 32, 32>}, {transform_indices = @transform_4, window_bounds = array<i64: 1, 32, 2048>}, {transform_indices = @transform_5, window_bounds = array<i64: 1, 1, 2048>}, {transform_indices = @transform_6, window_bounds = array<i64: 1, 2048, 32>}, {transform_indices = @transform_7, window_bounds = array<i64: 1, 8, 32>}, {pipeline_mode = #tpu.pipeline_mode<synchronous>, transform_indices = @transform_8, window_bounds = array<i64: 16, 32>}]} {
    %c0_i32 = arith.constant 0 : i32
    %0 = arith.cmpi eq, %arg0, %c0_i32 : i32
    %1 = arith.extui %0 : i1 to i32
    %c0_i32_0 = arith.constant 0 : i32
    %2 = arith.cmpi ne, %1, %c0_i32_0 : i32
    scf.if %2 {
      %c0_79 = arith.constant 0 : index
      %c0_80 = arith.constant 0 : index
      %268 = vector.load %arg1[%c0_79, %c0_80] : memref<16x32xbf16, #tpu.memory_space<vmem>>, vector<16x32xbf16>
      %c0_81 = arith.constant 0 : index
      %c0_82 = arith.constant 0 : index
      %269 = vector.load %arg9[%c0_81, %c0_82] : memref<16x32xbf16, #tpu.memory_space<vmem>>, vector<16x32xbf16>
      tpu.vector_store %arg9[%c0_81, %c0_82], %268 {strides = array<i32>} : memref<16x32xbf16, #tpu.memory_space<vmem>>, vector<16x32xbf16>,
    } else {
    }
    %c0 = arith.constant 0 : index
    %c0_1 = arith.constant 0 : index
    %c0_2 = arith.constant 0 : index
    %3 = vector.load %arg8[%c0, %c0_1, %c0_2] : memref<1x8x32xf32, #tpu.memory_space<vmem>>, vector<1x8x32xf32>
    %4 = vector.shape_cast %3 : vector<1x8x32xf32> to vector<8x32xf32>
    %5 = vector.extract_strided_slice %4 {offsets = [0, 0], sizes = [1, 32], strides = [1, 1]} : vector<8x32xf32> to vector<1x32xf32>
    %6 = vector.extract_strided_slice %4 {offsets = [5, 0], sizes = [1, 32], strides = [1, 1]} : vector<8x32xf32> to vector<1x32xf32>
    %7 = vector.extract_strided_slice %4 {offsets = [1, 0], sizes = [1, 32], strides = [1, 1]} : vector<8x32xf32> to vector<1x32xf32>
    %8 = vector.extract_strided_slice %4 {offsets = [2, 0], sizes = [1, 32], strides = [1, 1]} : vector<8x32xf32> to vector<1x32xf32>
    %9 = vector.extract_strided_slice %4 {offsets = [3, 0], sizes = [1, 32], strides = [1, 1]} : vector<8x32xf32> to vector<1x32xf32>
    %10 = vector.extract_strided_slice %4 {offsets = [4, 0], sizes = [1, 32], strides = [1, 1]} : vector<8x32xf32> to vector<1x32xf32>
    %11 = vector.extract_strided_slice %4 {offsets = [6, 0], sizes = [1, 32], strides = [1, 1]} : vector<8x32xf32> to vector<1x32xf32>
    %12 = vector.extract_strided_slice %4 {offsets = [7, 0], sizes = [1, 32], strides = [1, 1]} : vector<8x32xf32> to vector<1x32xf32>
    %c0_3 = arith.constant 0 : index
    %c0_4 = arith.constant 0 : index
    %c0_5 = arith.constant 0 : index
    %13 = vector.load %arg3[%c0_3, %c0_4, %c0_5] : memref<1x1x96xf32, #tpu.memory_space<vmem>>, vector<1x1x96xf32>
    %14 = vector.shape_cast %13 : vector<1x1x96xf32> to vector<1x96xf32>
    %c0_6 = arith.constant 0 : index
    %c0_7 = arith.constant 0 : index
    %c0_8 = arith.constant 0 : index
    %15 = vector.load %arg6[%c0_6, %c0_7, %c0_8] : memref<1x1x2048xf32, #tpu.memory_space<vmem>>, vector<1x1x2048xf32>
    %16 = vector.shape_cast %15 : vector<1x1x2048xf32> to vector<1x2048xf32>
    %17 = tpu.iota {dimensions = array<i32: 0>} : vector<8x8xi32>
    %18 = tpu.iota {dimensions = array<i32: 1>} : vector<8x8xi32>
    %19 = arith.cmpi sle, %18, %17 : vector<8x8xi32>
    %cst = arith.constant 0.000000e+00 : f32
    %cst_9 = arith.constant -1.000000e+09 : f32
    %20 = vector.broadcast %cst : f32 to vector<8x8xf32>
    %21 = vector.broadcast %cst_9 : f32 to vector<8x8xf32>
    %22 = arith.select %19, %20, %21 : vector<8x8xi1>, vector<8x8xf32>
    %c0_10 = arith.constant 0 : index
    %c0_11 = arith.constant 0 : index
    %23 = vector.load %arg9[%c0_10, %c0_11] : memref<16x32xbf16, #tpu.memory_space<vmem>>, vector<16x32xbf16>
    %24 = arith.extf %23 : vector<16x32xbf16> to vector<16x32xf32>
    %25 = arith.truncf %24 : vector<16x32xf32> to vector<16x32xbf16>
    %c0_12 = arith.constant 0 : index
    %c0_13 = arith.constant 0 : index
    %c0_14 = arith.constant 0 : index
    %26 = vector.load %arg2[%c0_12, %c0_13, %c0_14] : memref<1x32x96xbf16, #tpu.memory_space<vmem>>, vector<1x32x96xbf16>
    %27 = vector.shape_cast %26 : vector<1x32x96xbf16> to vector<32x96xbf16>
    %cst_15 = arith.constant dense<0.000000e+00> : vector<16x96xf32>
    %28 = tpu.matmul %25, %27, %cst_15 {dimension_numbers = #tpu.dot_dimension_numbers<[1], [0], [0], [1], [0, 0, 1, 1], [], []>} : vector<16x32xbf16>, vector<32x96xbf16>, vector<16x96xf32> -> vector<16x96xf32>
    %29 = vector.broadcast %14 : vector<1x96xf32> to vector<16x96xf32>
    %30 = arith.addf %28, %29 : vector<16x96xf32>
    %31 = vector.extract_strided_slice %30 {offsets = [0, 0], sizes = [16, 32], strides = [1, 1]} : vector<16x96xf32> to vector<16x32xf32>
    %cst_16 = arith.constant 0.353553385 : f32
    %32 = vector.broadcast %cst_16 : f32 to vector<16x32xf32>
    %33 = arith.mulf %31, %32 : vector<16x32xf32>
    %34 = arith.truncf %33 : vector<16x32xf32> to vector<16x32xbf16>
    %35 = vector.extract_strided_slice %30 {offsets = [0, 32], sizes = [16, 32], strides = [1, 1]} : vector<16x96xf32> to vector<16x32xf32>
    %36 = arith.truncf %35 : vector<16x32xf32> to vector<16x32xbf16>
    %37 = vector.extract_strided_slice %30 {offsets = [0, 64], sizes = [16, 32], strides = [1, 1]} : vector<16x96xf32> to vector<16x32xf32>
    %38 = arith.truncf %37 : vector<16x32xf32> to vector<16x32xbf16>
    %39 = vector.extract_strided_slice %34 {offsets = [0, 0], sizes = [8, 8], strides = [1, 1]} : vector<16x32xbf16> to vector<8x8xbf16>
    %40 = vector.extract_strided_slice %36 {offsets = [0, 0], sizes = [8, 8], strides = [1, 1]} : vector<16x32xbf16> to vector<8x8xbf16>
    "tpu.trace_start"() <{level = 10 : i32, message = "qd,kd->qk"}> : () -> ()
    %cst_17 = arith.constant dense<0.000000e+00> : vector<8x8xf32>
    %41 = tpu.matmul %39, %40, %cst_17 {dimension_numbers = #tpu.dot_dimension_numbers<[1], [1], [0], [0], [0, 0, 1, 0], [], []>} : vector<8x8xbf16>, vector<8x8xbf16>, vector<8x8xf32> -> vector<8x8xf32>
    "tpu.trace_stop"() : () -> ()
    %42 = arith.addf %41, %22 : vector<8x8xf32>
    %cst_18 = arith.constant dense<0xFF800000> : vector<8xf32>
    %43 = vector.multi_reduction <maximumf>, %42, %cst_18 [1] : vector<8x8xf32> to vector<8xf32>
    %44 = vector.shape_cast %43 : vector<8xf32> to vector<8x1xf32>
    %45 = vector.broadcast %44 : vector<8x1xf32> to vector<8x8xf32>
    %46 = arith.subf %42, %45 : vector<8x8xf32>
    %47 = math.exp %46 : vector<8x8xf32>
    %cst_19 = arith.constant dense<0.000000e+00> : vector<8xf32>
    %48 = vector.multi_reduction <add>, %47, %cst_19 [1] : vector<8x8xf32> to vector<8xf32>
    %49 = vector.shape_cast %48 : vector<8xf32> to vector<8x1xf32>
    %50 = arith.truncf %47 : vector<8x8xf32> to vector<8x8xbf16>
    %51 = vector.extract_strided_slice %38 {offsets = [0, 0], sizes = [8, 8], strides = [1, 1]} : vector<16x32xbf16> to vector<8x8xbf16>
    %cst_20 = arith.constant dense<0.000000e+00> : vector<8x8xf32>
    %52 = tpu.matmul %50, %51, %cst_20 {dimension_numbers = #tpu.dot_dimension_numbers<[1], [0], [0], [1], [0, 0, 1, 1], [], []>} : vector<8x8xbf16>, vector<8x8xbf16>, vector<8x8xf32> -> vector<8x8xf32>
    %53 = tpu.reciprocal %49 {approx = true} : vector<8x1xf32> -> vector<8x1xf32>
    %54 = vector.broadcast %53 : vector<8x1xf32> to vector<8x8xf32>
    %55 = arith.mulf %52, %54 : vector<8x8xf32>
    %56 = vector.extract_strided_slice %34 {offsets = [0, 8], sizes = [8, 8], strides = [1, 1]} : vector<16x32xbf16> to vector<8x8xbf16>
    %57 = vector.extract_strided_slice %36 {offsets = [0, 8], sizes = [8, 8], strides = [1, 1]} : vector<16x32xbf16> to vector<8x8xbf16>
    "tpu.trace_start"() <{level = 10 : i32, message = "qd,kd->qk"}> : () -> ()
    %cst_21 = arith.constant dense<0.000000e+00> : vector<8x8xf32>
    %58 = tpu.matmul %56, %57, %cst_21 {dimension_numbers = #tpu.dot_dimension_numbers<[1], [1], [0], [0], [0, 0, 1, 0], [], []>} : vector<8x8xbf16>, vector<8x8xbf16>, vector<8x8xf32> -> vector<8x8xf32>
    "tpu.trace_stop"() : () -> ()
    %59 = arith.addf %58, %22 : vector<8x8xf32>
    %cst_22 = arith.constant dense<0xFF800000> : vector<8xf32>
    %60 = vector.multi_reduction <maximumf>, %59, %cst_22 [1] : vector<8x8xf32> to vector<8xf32>
    %61 = vector.shape_cast %60 : vector<8xf32> to vector<8x1xf32>
    %62 = vector.broadcast %61 : vector<8x1xf32> to vector<8x8xf32>
    %63 = arith.subf %59, %62 : vector<8x8xf32>
    %64 = math.exp %63 : vector<8x8xf32>
    %cst_23 = arith.constant dense<0.000000e+00> : vector<8xf32>
    %65 = vector.multi_reduction <add>, %64, %cst_23 [1] : vector<8x8xf32> to vector<8xf32>
    %66 = vector.shape_cast %65 : vector<8xf32> to vector<8x1xf32>
    %67 = arith.truncf %64 : vector<8x8xf32> to vector<8x8xbf16>
    %68 = vector.extract_strided_slice %38 {offsets = [0, 8], sizes = [8, 8], strides = [1, 1]} : vector<16x32xbf16> to vector<8x8xbf16>
    %cst_24 = arith.constant dense<0.000000e+00> : vector<8x8xf32>
    %69 = tpu.matmul %67, %68, %cst_24 {dimension_numbers = #tpu.dot_dimension_numbers<[1], [0], [0], [1], [0, 0, 1, 1], [], []>} : vector<8x8xbf16>, vector<8x8xbf16>, vector<8x8xf32> -> vector<8x8xf32>
    %70 = tpu.reciprocal %66 {approx = true} : vector<8x1xf32> -> vector<8x1xf32>
    %71 = vector.broadcast %70 : vector<8x1xf32> to vector<8x8xf32>
    %72 = arith.mulf %69, %71 : vector<8x8xf32>
    %73 = vector.extract_strided_slice %34 {offsets = [0, 16], sizes = [8, 8], strides = [1, 1]} : vector<16x32xbf16> to vector<8x8xbf16>
    %74 = vector.extract_strided_slice %36 {offsets = [0, 16], sizes = [8, 8], strides = [1, 1]} : vector<16x32xbf16> to vector<8x8xbf16>
    "tpu.trace_start"() <{level = 10 : i32, message = "qd,kd->qk"}> : () -> ()
    %cst_25 = arith.constant dense<0.000000e+00> : vector<8x8xf32>
    %75 = tpu.matmul %73, %74, %cst_25 {dimension_numbers = #tpu.dot_dimension_numbers<[1], [1], [0], [0], [0, 0, 1, 0], [], []>} : vector<8x8xbf16>, vector<8x8xbf16>, vector<8x8xf32> -> vector<8x8xf32>
    "tpu.trace_stop"() : () -> ()
    %76 = arith.addf %75, %22 : vector<8x8xf32>
    %cst_26 = arith.constant dense<0xFF800000> : vector<8xf32>
    %77 = vector.multi_reduction <maximumf>, %76, %cst_26 [1] : vector<8x8xf32> to vector<8xf32>
    %78 = vector.shape_cast %77 : vector<8xf32> to vector<8x1xf32>
    %79 = vector.broadcast %78 : vector<8x1xf32> to vector<8x8xf32>
    %80 = arith.subf %76, %79 : vector<8x8xf32>
    %81 = math.exp %80 : vector<8x8xf32>
    %cst_27 = arith.constant dense<0.000000e+00> : vector<8xf32>
    %82 = vector.multi_reduction <add>, %81, %cst_27 [1] : vector<8x8xf32> to vector<8xf32>
    %83 = vector.shape_cast %82 : vector<8xf32> to vector<8x1xf32>
    %84 = arith.truncf %81 : vector<8x8xf32> to vector<8x8xbf16>
    %85 = vector.extract_strided_slice %38 {offsets = [0, 16], sizes = [8, 8], strides = [1, 1]} : vector<16x32xbf16> to vector<8x8xbf16>
    %cst_28 = arith.constant dense<0.000000e+00> : vector<8x8xf32>
    %86 = tpu.matmul %84, %85, %cst_28 {dimension_numbers = #tpu.dot_dimension_numbers<[1], [0], [0], [1], [0, 0, 1, 1], [], []>} : vector<8x8xbf16>, vector<8x8xbf16>, vector<8x8xf32> -> vector<8x8xf32>
    %87 = tpu.reciprocal %83 {approx = true} : vector<8x1xf32> -> vector<8x1xf32>
    %88 = vector.broadcast %87 : vector<8x1xf32> to vector<8x8xf32>
    %89 = arith.mulf %86, %88 : vector<8x8xf32>
    %90 = vector.extract_strided_slice %34 {offsets = [0, 24], sizes = [8, 8], strides = [1, 1]} : vector<16x32xbf16> to vector<8x8xbf16>
    %91 = vector.extract_strided_slice %36 {offsets = [0, 24], sizes = [8, 8], strides = [1, 1]} : vector<16x32xbf16> to vector<8x8xbf16>
    "tpu.trace_start"() <{level = 10 : i32, message = "qd,kd->qk"}> : () -> ()
    %cst_29 = arith.constant dense<0.000000e+00> : vector<8x8xf32>
    %92 = tpu.matmul %90, %91, %cst_29 {dimension_numbers = #tpu.dot_dimension_numbers<[1], [1], [0], [0], [0, 0, 1, 0], [], []>} : vector<8x8xbf16>, vector<8x8xbf16>, vector<8x8xf32> -> vector<8x8xf32>
    "tpu.trace_stop"() : () -> ()
    %93 = arith.addf %92, %22 : vector<8x8xf32>
    %cst_30 = arith.constant dense<0xFF800000> : vector<8xf32>
    %94 = vector.multi_reduction <maximumf>, %93, %cst_30 [1] : vector<8x8xf32> to vector<8xf32>
    %95 = vector.shape_cast %94 : vector<8xf32> to vector<8x1xf32>
    %96 = vector.broadcast %95 : vector<8x1xf32> to vector<8x8xf32>
    %97 = arith.subf %93, %96 : vector<8x8xf32>
    %98 = math.exp %97 : vector<8x8xf32>
    %cst_31 = arith.constant dense<0.000000e+00> : vector<8xf32>
    %99 = vector.multi_reduction <add>, %98, %cst_31 [1] : vector<8x8xf32> to vector<8xf32>
    %100 = vector.shape_cast %99 : vector<8xf32> to vector<8x1xf32>
    %101 = arith.truncf %98 : vector<8x8xf32> to vector<8x8xbf16>
    %102 = vector.extract_strided_slice %38 {offsets = [0, 24], sizes = [8, 8], strides = [1, 1]} : vector<16x32xbf16> to vector<8x8xbf16>
    %cst_32 = arith.constant dense<0.000000e+00> : vector<8x8xf32>
    %103 = tpu.matmul %101, %102, %cst_32 {dimension_numbers = #tpu.dot_dimension_numbers<[1], [0], [0], [1], [0, 0, 1, 1], [], []>} : vector<8x8xbf16>, vector<8x8xbf16>, vector<8x8xf32> -> vector<8x8xf32>
    %104 = tpu.reciprocal %100 {approx = true} : vector<8x1xf32> -> vector<8x1xf32>
    %105 = vector.broadcast %104 : vector<8x1xf32> to vector<8x8xf32>
    %106 = arith.mulf %103, %105 : vector<8x8xf32>
    %107 = tpu.concatenate %55, %72, %89, %106 in 1 : vector<8x8xf32>, vector<8x8xf32>, vector<8x8xf32>, vector<8x8xf32> -> vector<8x32xf32>
    %108 = vector.extract_strided_slice %34 {offsets = [8, 0], sizes = [8, 8], strides = [1, 1]} : vector<16x32xbf16> to vector<8x8xbf16>
    %109 = vector.extract_strided_slice %36 {offsets = [8, 0], sizes = [8, 8], strides = [1, 1]} : vector<16x32xbf16> to vector<8x8xbf16>
    "tpu.trace_start"() <{level = 10 : i32, message = "qd,kd->qk"}> : () -> ()
    %cst_33 = arith.constant dense<0.000000e+00> : vector<8x8xf32>
    %110 = tpu.matmul %108, %109, %cst_33 {dimension_numbers = #tpu.dot_dimension_numbers<[1], [1], [0], [0], [0, 0, 1, 0], [], []>} : vector<8x8xbf16>, vector<8x8xbf16>, vector<8x8xf32> -> vector<8x8xf32>
    "tpu.trace_stop"() : () -> ()
    %111 = arith.addf %110, %22 : vector<8x8xf32>
    %cst_34 = arith.constant dense<0xFF800000> : vector<8xf32>
    %112 = vector.multi_reduction <maximumf>, %111, %cst_34 [1] : vector<8x8xf32> to vector<8xf32>
    %113 = vector.shape_cast %112 : vector<8xf32> to vector<8x1xf32>
    %114 = vector.broadcast %113 : vector<8x1xf32> to vector<8x8xf32>
    %115 = arith.subf %111, %114 : vector<8x8xf32>
    %116 = math.exp %115 : vector<8x8xf32>
    %cst_35 = arith.constant dense<0.000000e+00> : vector<8xf32>
    %117 = vector.multi_reduction <add>, %116, %cst_35 [1] : vector<8x8xf32> to vector<8xf32>
    %118 = vector.shape_cast %117 : vector<8xf32> to vector<8x1xf32>
    %119 = arith.truncf %116 : vector<8x8xf32> to vector<8x8xbf16>
    %120 = vector.extract_strided_slice %38 {offsets = [8, 0], sizes = [8, 8], strides = [1, 1]} : vector<16x32xbf16> to vector<8x8xbf16>
    %cst_36 = arith.constant dense<0.000000e+00> : vector<8x8xf32>
    %121 = tpu.matmul %119, %120, %cst_36 {dimension_numbers = #tpu.dot_dimension_numbers<[1], [0], [0], [1], [0, 0, 1, 1], [], []>} : vector<8x8xbf16>, vector<8x8xbf16>, vector<8x8xf32> -> vector<8x8xf32>
    %122 = tpu.reciprocal %118 {approx = true} : vector<8x1xf32> -> vector<8x1xf32>
    %123 = vector.broadcast %122 : vector<8x1xf32> to vector<8x8xf32>
    %124 = arith.mulf %121, %123 : vector<8x8xf32>
    %125 = vector.extract_strided_slice %34 {offsets = [8, 8], sizes = [8, 8], strides = [1, 1]} : vector<16x32xbf16> to vector<8x8xbf16>
    %126 = vector.extract_strided_slice %36 {offsets = [8, 8], sizes = [8, 8], strides = [1, 1]} : vector<16x32xbf16> to vector<8x8xbf16>
    "tpu.trace_start"() <{level = 10 : i32, message = "qd,kd->qk"}> : () -> ()
    %cst_37 = arith.constant dense<0.000000e+00> : vector<8x8xf32>
    %127 = tpu.matmul %125, %126, %cst_37 {dimension_numbers = #tpu.dot_dimension_numbers<[1], [1], [0], [0], [0, 0, 1, 0], [], []>} : vector<8x8xbf16>, vector<8x8xbf16>, vector<8x8xf32> -> vector<8x8xf32>
    "tpu.trace_stop"() : () -> ()
    %128 = arith.addf %127, %22 : vector<8x8xf32>
    %cst_38 = arith.constant dense<0xFF800000> : vector<8xf32>
    %129 = vector.multi_reduction <maximumf>, %128, %cst_38 [1] : vector<8x8xf32> to vector<8xf32>
    %130 = vector.shape_cast %129 : vector<8xf32> to vector<8x1xf32>
    %131 = vector.broadcast %130 : vector<8x1xf32> to vector<8x8xf32>
    %132 = arith.subf %128, %131 : vector<8x8xf32>
    %133 = math.exp %132 : vector<8x8xf32>
    %cst_39 = arith.constant dense<0.000000e+00> : vector<8xf32>
    %134 = vector.multi_reduction <add>, %133, %cst_39 [1] : vector<8x8xf32> to vector<8xf32>
    %135 = vector.shape_cast %134 : vector<8xf32> to vector<8x1xf32>
    %136 = arith.truncf %133 : vector<8x8xf32> to vector<8x8xbf16>
    %137 = vector.extract_strided_slice %38 {offsets = [8, 8], sizes = [8, 8], strides = [1, 1]} : vector<16x32xbf16> to vector<8x8xbf16>
    %cst_40 = arith.constant dense<0.000000e+00> : vector<8x8xf32>
    %138 = tpu.matmul %136, %137, %cst_40 {dimension_numbers = #tpu.dot_dimension_numbers<[1], [0], [0], [1], [0, 0, 1, 1], [], []>} : vector<8x8xbf16>, vector<8x8xbf16>, vector<8x8xf32> -> vector<8x8xf32>
    %139 = tpu.reciprocal %135 {approx = true} : vector<8x1xf32> -> vector<8x1xf32>
    %140 = vector.broadcast %139 : vector<8x1xf32> to vector<8x8xf32>
    %141 = arith.mulf %138, %140 : vector<8x8xf32>
    %142 = vector.extract_strided_slice %34 {offsets = [8, 16], sizes = [8, 8], strides = [1, 1]} : vector<16x32xbf16> to vector<8x8xbf16>
    %143 = vector.extract_strided_slice %36 {offsets = [8, 16], sizes = [8, 8], strides = [1, 1]} : vector<16x32xbf16> to vector<8x8xbf16>
    "tpu.trace_start"() <{level = 10 : i32, message = "qd,kd->qk"}> : () -> ()
    %cst_41 = arith.constant dense<0.000000e+00> : vector<8x8xf32>
    %144 = tpu.matmul %142, %143, %cst_41 {dimension_numbers = #tpu.dot_dimension_numbers<[1], [1], [0], [0], [0, 0, 1, 0], [], []>} : vector<8x8xbf16>, vector<8x8xbf16>, vector<8x8xf32> -> vector<8x8xf32>
    "tpu.trace_stop"() : () -> ()
    %145 = arith.addf %144, %22 : vector<8x8xf32>
    %cst_42 = arith.constant dense<0xFF800000> : vector<8xf32>
    %146 = vector.multi_reduction <maximumf>, %145, %cst_42 [1] : vector<8x8xf32> to vector<8xf32>
    %147 = vector.shape_cast %146 : vector<8xf32> to vector<8x1xf32>
    %148 = vector.broadcast %147 : vector<8x1xf32> to vector<8x8xf32>
    %149 = arith.subf %145, %148 : vector<8x8xf32>
    %150 = math.exp %149 : vector<8x8xf32>
    %cst_43 = arith.constant dense<0.000000e+00> : vector<8xf32>
    %151 = vector.multi_reduction <add>, %150, %cst_43 [1] : vector<8x8xf32> to vector<8xf32>
    %152 = vector.shape_cast %151 : vector<8xf32> to vector<8x1xf32>
    %153 = arith.truncf %150 : vector<8x8xf32> to vector<8x8xbf16>
    %154 = vector.extract_strided_slice %38 {offsets = [8, 16], sizes = [8, 8], strides = [1, 1]} : vector<16x32xbf16> to vector<8x8xbf16>
    %cst_44 = arith.constant dense<0.000000e+00> : vector<8x8xf32>
    %155 = tpu.matmul %153, %154, %cst_44 {dimension_numbers = #tpu.dot_dimension_numbers<[1], [0], [0], [1], [0, 0, 1, 1], [], []>} : vector<8x8xbf16>, vector<8x8xbf16>, vector<8x8xf32> -> vector<8x8xf32>
    %156 = tpu.reciprocal %152 {approx = true} : vector<8x1xf32> -> vector<8x1xf32>
    %157 = vector.broadcast %156 : vector<8x1xf32> to vector<8x8xf32>
    %158 = arith.mulf %155, %157 : vector<8x8xf32>
    %159 = vector.extract_strided_slice %34 {offsets = [8, 24], sizes = [8, 8], strides = [1, 1]} : vector<16x32xbf16> to vector<8x8xbf16>
    %160 = vector.extract_strided_slice %36 {offsets = [8, 24], sizes = [8, 8], strides = [1, 1]} : vector<16x32xbf16> to vector<8x8xbf16>
    "tpu.trace_start"() <{level = 10 : i32, message = "qd,kd->qk"}> : () -> ()
    %cst_45 = arith.constant dense<0.000000e+00> : vector<8x8xf32>
    %161 = tpu.matmul %159, %160, %cst_45 {dimension_numbers = #tpu.dot_dimension_numbers<[1], [1], [0], [0], [0, 0, 1, 0], [], []>} : vector<8x8xbf16>, vector<8x8xbf16>, vector<8x8xf32> -> vector<8x8xf32>
    "tpu.trace_stop"() : () -> ()
    %162 = arith.addf %161, %22 : vector<8x8xf32>
    %cst_46 = arith.constant dense<0xFF800000> : vector<8xf32>
    %163 = vector.multi_reduction <maximumf>, %162, %cst_46 [1] : vector<8x8xf32> to vector<8xf32>
    %164 = vector.shape_cast %163 : vector<8xf32> to vector<8x1xf32>
    %165 = vector.broadcast %164 : vector<8x1xf32> to vector<8x8xf32>
    %166 = arith.subf %162, %165 : vector<8x8xf32>
    %167 = math.exp %166 : vector<8x8xf32>
    %cst_47 = arith.constant dense<0.000000e+00> : vector<8xf32>
    %168 = vector.multi_reduction <add>, %167, %cst_47 [1] : vector<8x8xf32> to vector<8xf32>
    %169 = vector.shape_cast %168 : vector<8xf32> to vector<8x1xf32>
    %170 = arith.truncf %167 : vector<8x8xf32> to vector<8x8xbf16>
    %171 = vector.extract_strided_slice %38 {offsets = [8, 24], sizes = [8, 8], strides = [1, 1]} : vector<16x32xbf16> to vector<8x8xbf16>
    %cst_48 = arith.constant dense<0.000000e+00> : vector<8x8xf32>
    %172 = tpu.matmul %170, %171, %cst_48 {dimension_numbers = #tpu.dot_dimension_numbers<[1], [0], [0], [1], [0, 0, 1, 1], [], []>} : vector<8x8xbf16>, vector<8x8xbf16>, vector<8x8xf32> -> vector<8x8xf32>
    %173 = tpu.reciprocal %169 {approx = true} : vector<8x1xf32> -> vector<8x1xf32>
    %174 = vector.broadcast %173 : vector<8x1xf32> to vector<8x8xf32>
    %175 = arith.mulf %172, %174 : vector<8x8xf32>
    %176 = tpu.concatenate %124, %141, %158, %175 in 1 : vector<8x8xf32>, vector<8x8xf32>, vector<8x8xf32>, vector<8x8xf32> -> vector<8x32xf32>
    %177 = tpu.concatenate %107, %176 in 0 : vector<8x32xf32>, vector<8x32xf32> -> vector<16x32xf32>
    %178 = arith.truncf %177 : vector<16x32xf32> to vector<16x32xbf16>
    %c0_49 = arith.constant 0 : index
    %c0_50 = arith.constant 0 : index
    %c0_51 = arith.constant 0 : index
    %179 = vector.load %arg4[%c0_49, %c0_50, %c0_51] : memref<1x32x32xbf16, #tpu.memory_space<vmem>>, vector<1x32x32xbf16>
    %180 = vector.shape_cast %179 : vector<1x32x32xbf16> to vector<32x32xbf16>
    %cst_52 = arith.constant dense<0.000000e+00> : vector<16x32xf32>
    %181 = tpu.matmul %178, %180, %cst_52 {dimension_numbers = #tpu.dot_dimension_numbers<[1], [0], [0], [1], [0, 0, 1, 1], [], []>} : vector<16x32xbf16>, vector<32x32xbf16>, vector<16x32xf32> -> vector<16x32xf32>
    %182 = vector.broadcast %5 : vector<1x32xf32> to vector<16x32xf32>
    %183 = arith.addf %181, %182 : vector<16x32xf32>
    %184 = arith.addf %24, %183 : vector<16x32xf32>
    %cst_53 = arith.constant dense<0.000000e+00> : vector<16xf32>
    %185 = vector.multi_reduction <add>, %184, %cst_53 [1] : vector<16x32xf32> to vector<16xf32>
    %186 = vector.shape_cast %185 : vector<16xf32> to vector<16x1xf32>
    %cst_54 = arith.constant 3.200000e+01 : f32
    %187 = vector.broadcast %cst_54 : f32 to vector<16x1xf32>
    %188 = arith.divf %186, %187 : vector<16x1xf32>
    %189 = vector.broadcast %188 : vector<16x1xf32> to vector<16x32xf32>
    %190 = arith.subf %184, %189 : vector<16x32xf32>
    %191 = arith.mulf %190, %190 : vector<16x32xf32>
    %cst_55 = arith.constant dense<0.000000e+00> : vector<16xf32>
    %192 = vector.multi_reduction <add>, %191, %cst_55 [1] : vector<16x32xf32> to vector<16xf32>
    %193 = vector.shape_cast %192 : vector<16xf32> to vector<16x1xf32>
    %cst_56 = arith.constant 3.200000e+01 : f32
    %194 = vector.broadcast %cst_56 : f32 to vector<16x1xf32>
    %195 = arith.divf %193, %194 : vector<16x1xf32>
    %196 = vector.broadcast %188 : vector<16x1xf32> to vector<16x32xf32>
    %197 = arith.subf %184, %196 : vector<16x32xf32>
    %cst_57 = arith.constant 9.99999974E-6 : f32
    %198 = vector.broadcast %cst_57 : f32 to vector<16x1xf32>
    %199 = arith.addf %195, %198 : vector<16x1xf32>
    %200 = math.rsqrt %199 : vector<16x1xf32>
    %201 = vector.broadcast %200 : vector<16x1xf32> to vector<16x32xf32>
    %202 = arith.mulf %197, %201 : vector<16x32xf32>
    %203 = vector.broadcast %7 : vector<1x32xf32> to vector<16x32xf32>
    %204 = arith.mulf %202, %203 : vector<16x32xf32>
    %205 = vector.broadcast %8 : vector<1x32xf32> to vector<16x32xf32>
    %206 = arith.addf %204, %205 : vector<16x32xf32>
    %cst_58 = arith.constant dense<0.000000e+00> : vector<16xf32>
    %207 = vector.multi_reduction <add>, %206, %cst_58 [1] : vector<16x32xf32> to vector<16xf32>
    %208 = vector.shape_cast %207 : vector<16xf32> to vector<16x1xf32>
    %cst_59 = arith.constant 3.200000e+01 : f32
    %209 = vector.broadcast %cst_59 : f32 to vector<16x1xf32>
    %210 = arith.divf %208, %209 : vector<16x1xf32>
    %211 = vector.broadcast %210 : vector<16x1xf32> to vector<16x32xf32>
    %212 = arith.subf %206, %211 : vector<16x32xf32>
    %213 = arith.mulf %212, %212 : vector<16x32xf32>
    %cst_60 = arith.constant dense<0.000000e+00> : vector<16xf32>
    %214 = vector.multi_reduction <add>, %213, %cst_60 [1] : vector<16x32xf32> to vector<16xf32>
    %215 = vector.shape_cast %214 : vector<16xf32> to vector<16x1xf32>
    %cst_61 = arith.constant 3.200000e+01 : f32
    %216 = vector.broadcast %cst_61 : f32 to vector<16x1xf32>
    %217 = arith.divf %215, %216 : vector<16x1xf32>
    %218 = vector.broadcast %210 : vector<16x1xf32> to vector<16x32xf32>
    %219 = arith.subf %206, %218 : vector<16x32xf32>
    %cst_62 = arith.constant 9.99999974E-6 : f32
    %220 = vector.broadcast %cst_62 : f32 to vector<16x1xf32>
    %221 = arith.addf %217, %220 : vector<16x1xf32>
    %222 = math.rsqrt %221 : vector<16x1xf32>
    %223 = vector.broadcast %222 : vector<16x1xf32> to vector<16x32xf32>
    %224 = arith.mulf %219, %223 : vector<16x32xf32>
    %225 = vector.broadcast %9 : vector<1x32xf32> to vector<16x32xf32>
    %226 = arith.mulf %224, %225 : vector<16x32xf32>
    %227 = vector.broadcast %10 : vector<1x32xf32> to vector<16x32xf32>
    %228 = arith.addf %226, %227 : vector<16x32xf32>
    %229 = arith.truncf %228 : vector<16x32xf32> to vector<16x32xbf16>
    %c0_63 = arith.constant 0 : index
    %c0_64 = arith.constant 0 : index
    %c0_65 = arith.constant 0 : index
    %230 = vector.load %arg5[%c0_63, %c0_64, %c0_65] : memref<1x32x2048xbf16, #tpu.memory_space<vmem>>, vector<1x32x2048xbf16>
    %231 = vector.shape_cast %230 : vector<1x32x2048xbf16> to vector<32x2048xbf16>
    %cst_66 = arith.constant dense<0.000000e+00> : vector<16x2048xf32>
    %232 = tpu.matmul %229, %231, %cst_66 {dimension_numbers = #tpu.dot_dimension_numbers<[1], [0], [0], [1], [0, 0, 1, 1], [], []>} : vector<16x32xbf16>, vector<32x2048xbf16>, vector<16x2048xf32> -> vector<16x2048xf32>
    %233 = vector.broadcast %16 : vector<1x2048xf32> to vector<16x2048xf32>
    %234 = arith.addf %232, %233 : vector<16x2048xf32>
    %cst_67 = arith.constant 0.000000e+00 : f32
    %235 = vector.broadcast %cst_67 : f32 to vector<16x2048xf32>
    %236 = arith.maximumf %234, %235 : vector<16x2048xf32>
    %237 = arith.truncf %236 : vector<16x2048xf32> to vector<16x2048xbf16>
    %c0_68 = arith.constant 0 : index
    %c0_69 = arith.constant 0 : index
    %c0_70 = arith.constant 0 : index
    %238 = vector.load %arg7[%c0_68, %c0_69, %c0_70] : memref<1x2048x32xbf16, #tpu.memory_space<vmem>>, vector<1x2048x32xbf16>
    %239 = vector.shape_cast %238 : vector<1x2048x32xbf16> to vector<2048x32xbf16>
    %cst_71 = arith.constant dense<0.000000e+00> : vector<16x32xf32>
    %240 = tpu.matmul %237, %239, %cst_71 {dimension_numbers = #tpu.dot_dimension_numbers<[1], [0], [0], [1], [0, 0, 1, 1], [], []>} : vector<16x2048xbf16>, vector<2048x32xbf16>, vector<16x32xf32> -> vector<16x32xf32>
    %241 = vector.broadcast %6 : vector<1x32xf32> to vector<16x32xf32>
    %242 = arith.addf %240, %241 : vector<16x32xf32>
    %243 = arith.addf %228, %242 : vector<16x32xf32>
    %cst_72 = arith.constant dense<0.000000e+00> : vector<16xf32>
    %244 = vector.multi_reduction <add>, %243, %cst_72 [1] : vector<16x32xf32> to vector<16xf32>
    %245 = vector.shape_cast %244 : vector<16xf32> to vector<16x1xf32>
    %cst_73 = arith.constant 3.200000e+01 : f32
    %246 = vector.broadcast %cst_73 : f32 to vector<16x1xf32>
    %247 = arith.divf %245, %246 : vector<16x1xf32>
    %248 = vector.broadcast %247 : vector<16x1xf32> to vector<16x32xf32>
    %249 = arith.subf %243, %248 : vector<16x32xf32>
    %250 = arith.mulf %249, %249 : vector<16x32xf32>
    %cst_74 = arith.constant dense<0.000000e+00> : vector<16xf32>
    %251 = vector.multi_reduction <add>, %250, %cst_74 [1] : vector<16x32xf32> to vector<16xf32>
    %252 = vector.shape_cast %251 : vector<16xf32> to vector<16x1xf32>
    %cst_75 = arith.constant 3.200000e+01 : f32
    %253 = vector.broadcast %cst_75 : f32 to vector<16x1xf32>
    %254 = arith.divf %252, %253 : vector<16x1xf32>
    %255 = vector.broadcast %247 : vector<16x1xf32> to vector<16x32xf32>
    %256 = arith.subf %243, %255 : vector<16x32xf32>
    %cst_76 = arith.constant 9.99999974E-6 : f32
    %257 = vector.broadcast %cst_76 : f32 to vector<16x1xf32>
    %258 = arith.addf %254, %257 : vector<16x1xf32>
    %259 = math.rsqrt %258 : vector<16x1xf32>
    %260 = vector.broadcast %259 : vector<16x1xf32> to vector<16x32xf32>
    %261 = arith.mulf %256, %260 : vector<16x32xf32>
    %262 = vector.broadcast %11 : vector<1x32xf32> to vector<16x32xf32>
    %263 = arith.mulf %261, %262 : vector<16x32xf32>
    %264 = vector.broadcast %12 : vector<1x32xf32> to vector<16x32xf32>
    %265 = arith.addf %263, %264 : vector<16x32xf32>
    %266 = arith.truncf %265 : vector<16x32xf32> to vector<16x32xbf16>
    %c0_77 = arith.constant 0 : index
    %c0_78 = arith.constant 0 : index
    %267 = vector.load %arg9[%c0_77, %c0_78] : memref<16x32xbf16, #tpu.memory_space<vmem>>, vector<16x32xbf16>
    tpu.vector_store %arg9[%c0_77, %c0_78], %266 {strides = array<i32>} : memref<16x32xbf16, #tpu.memory_space<vmem>>, vector<16x32xbf16>,
    return
  }
  func.func @transform_0(%arg0: i32) -> (i32, i32) {
    %c0_i32 = arith.constant 0 : i32
    %c0_i32_0 = arith.constant 0 : i32
    %c0_i32_1 = arith.constant 0 : i32
    return %c0_i32, %c0_i32_0 : i32, i32
  }
  func.func @transform_1(%arg0: i32) -> (i32, i32, i32) {
    %c0_i32 = arith.constant 0 : i32
    %c0_i32_0 = arith.constant 0 : i32
    %c0_i32_1 = arith.constant 0 : i32
    return %arg0, %c0_i32, %c0_i32_0 : i32, i32, i32
  }
  func.func @transform_2(%arg0: i32) -> (i32, i32, i32) {
    %c0_i32 = arith.constant 0 : i32
    %c0_i32_0 = arith.constant 0 : i32
    %c0_i32_1 = arith.constant 0 : i32
    return %arg0, %c0_i32, %c0_i32_0 : i32, i32, i32
  }
  func.func @transform_3(%arg0: i32) -> (i32, i32, i32) {
    %c0_i32 = arith.constant 0 : i32
    %c0_i32_0 = arith.constant 0 : i32
    %c0_i32_1 = arith.constant 0 : i32
    return %arg0, %c0_i32, %c0_i32_0 : i32, i32, i32
  }
  func.func @transform_4(%arg0: i32) -> (i32, i32, i32) {
    %c0_i32 = arith.constant 0 : i32
    %c0_i32_0 = arith.constant 0 : i32
    %c0_i32_1 = arith.constant 0 : i32
    return %arg0, %c0_i32, %c0_i32_0 : i32, i32, i32
  }
  func.func @transform_5(%arg0: i32) -> (i32, i32, i32) {
    %c0_i32 = arith.constant 0 : i32
    %c0_i32_0 = arith.constant 0 : i32
    %c0_i32_1 = arith.constant 0 : i32
    return %arg0, %c0_i32, %c0_i32_0 : i32, i32, i32
  }
  func.func @transform_6(%arg0: i32) -> (i32, i32, i32) {
    %c0_i32 = arith.constant 0 : i32
    %c0_i32_0 = arith.constant 0 : i32
    %c0_i32_1 = arith.constant 0 : i32
    return %arg0, %c0_i32, %c0_i32_0 : i32, i32, i32
  }
  func.func @transform_7(%arg0: i32) -> (i32, i32, i32) {
    %c0_i32 = arith.constant 0 : i32
    %c0_i32_0 = arith.constant 0 : i32
    %c0_i32_1 = arith.constant 0 : i32
    return %arg0, %c0_i32, %c0_i32_0 : i32, i32, i32
  }
  func.func @transform_8(%arg0: i32) -> (i32, i32) {
    %c0_i32 = arith.constant 0 : i32
    %c0_i32_0 = arith.constant 0 : i32
    %c0_i32_1 = arith.constant 0 : i32
    return %c0_i32, %c0_i32_0 : i32, i32
  }
}

</mosaic_0001>

<bundles_post_ra>
// kernel: tpu_custom_call.1
= control target key start
LH: loop header
LB: loop body
LE: loop exit
PB: predicated region body
PF: predicated region fallthrough
CT: control target
= control target key end

     0   :  { %13 = vsyncpa [#allocation3], 0  ;;  %s4629_s27 = smov 0   ;;  %s5197_s0 = inlined_call_operand.vmem [shape: bf16[16,32], index: 0, kind: input, shape index: {}]   ;;  %s5198_s1 = inlined_call_operand.vmem [shape: bf16[2,32,96], index: 1, kind: input, shape index: {}]   ;;  %s5199_s2 = inlined_call_operand.vmem [shape: f32[2,1,96], index: 2, kind: input, shape index: {}]   ;;  %s5200_s3 = inlined_call_operand.vmem [shape: bf16[2,32,32], index: 3, kind: input, shape index: {}]   ;;  %s5201_s4 = inlined_call_operand.vmem [shape: bf16[2,32,2048], index: 4, kind: input, shape index: {}]   ;;  %s5202_s5 = inlined_call_operand.vmem [shape: f32[2,1,2048], index: 5, kind: input, shape index: {}]   ;;  %s5203_s6 = inlined_call_operand.vmem [shape: bf16[2,2048,32], index: 6, kind: input, shape index: {}]   ;;  %s5204_s7 = inlined_call_operand.vmem [shape: f32[2,8,32], index: 7, kind: input, shape index: {}]   ;;  %s5205_s8 = inlined_call_operand.hbm [shape: bf16[16,32], index: 8, kind: output, shape index: {}]  }
   0x1 LB: > { %s4635_s28 = sadd.s32 4294967295, %s4562_s27   ;;  %p3755_p0 = scmp.ge.s32.totalorder %s4562_s27, 1  ;;  %s4562_s27 = sphi %s4629_s27, %s19_s27  }
   0x2   : > { %p314_p1 = scmp.lt.s32.totalorder %s4562_s27, 3 }
   0x4   : > { %p315_p2 = pnand %p3755_p0, %p314_p1 }
   0x5   : > { %p369_p3 = scmp.lt.s32.totalorder (!%p315_p2), %s4635_s28, 1  ;;  %p3766_p4 = scmp.ne.s32.totalorder (!%p315_p2), %s4635_s28, 0 }
   0x6   : > { %318 = sbr.rel (%p315_p2) target bundleno = 2892 (0xb4c), region = 52 }
   0xd   : > { %s4641_s29 = scalar_select %p369_p3, %s4635_s28, 1 }
   0xe   : > { %404 = sbr.rel (%p3766_p4) target bundleno = 21 (0x15), region = 56  ;;  %v405_v0 = vld [vmem:[%s5197_s0] sm:$0xf] (!%p3766_p4)  ;;  %vm407_vm0 = vcmask (!%p3766_p4), 257024   ;;  %v406_v1 = vld [vmem:[%s5197_s0 + $0x4] sm:$0xf] (!%p3766_p4) }
   0xf   : > { %s3965_s30 = sshll.u32 %s4641_s29, 4  ;;  %s376_s11 = scalar_lea.vmem %s5199_s2, %s4641_s29  ;;  %408 = vst.msk [vmem:[#allocation2] sm:$0xf] (!%p3766_p4), %vm407_vm0, %v405_v0  ;;  %409 = vst.msk [vmem:[#allocation2 + $0x4] sm:$0xf] (!%p3766_p4), %vm407_vm0, %v406_v1 }
  0x10   : > { %s373_s14 = scalar_lea.vmem %s5198_s1, %s3965_s30  ;;  %s4654_s17 = scalar_lea.vmem %s5200_s3, %s3965_s30 }
  0x11   : > { %s3967_s18 = sshll.u32 %s4641_s29, 8  ;;  %s4660_s21 = scalar_lea.vmem %s5202_s5, %s3965_s30 }
  0x12   : > { %s4665_s24 = scalar_lea.vmem %s5201_s4, %s3967_s18  ;;  %s3968_s25 = sshll.u32 %s4641_s29, 10 }
  0x13   : > { %s4671_s10 = scalar_lea.vmem %s5203_s6, %s3968_s25  ;;  %s3765_s12 = sshll.u32 %s4641_s29, 3 }
  0x14   : > { %s4677_s16 = scalar_lea.vmem %s5204_s7, %s3765_s12 }
  0x15 PF: > { %v4346_v2 = vld [vmem:[%s373_s14] sm:$0xff]   ;;  %v4564_v3 = vmov 0.0   ;;  %v4347_v4 = vld [vmem:[%s373_s14 + $0x8] sm:$0xff]   ;;  %vm4565_vm1 = vmmov 0   ;;  %vm451_vm2 = vcmask 261120   ;;  %s4566_s23 = smov 96   ;;  %v414_v43 = vlaneseq }
  0x16   : > { %4185 = vmatprep.subr.bf16.mxu0 %v4564_v3  ;;  %4193 = vmatprep.subr.bf16.mxu1 %v4564_v3  ;;  %v420_v5 = vld [vmem:[#allocation2] sm:$0xff]   ;;  %s4567_s25 = smov 120   ;;  %s4568_s26 = smov 88   ;;  %vm503_vm3 = vcmask 64512   ;;  %vm565_vm4 = vcmask 1043456   ;;  %vm955_vm6 = vcmask 130048  }
  0x17   : > { %4186 = vmatpush3.bf16.msra.mxu0 %v4346_v2  ;;  %4189 = vmatprep.mubr.msk.bf16.mxu0 %vm4565_vm1, %v4564_v3  ;;  %v3767_v6 = vld [vmem:[%s376_s11] ss:$0 sm:$0xff]  ;;  %s4569_s29 = smov 80   ;;  %s4570_s11 = smov 112   ;;  %v4761_v44 = vshrl.u32 %v414_v43, 7  ;;  %v417_v45 = vand.u32 127, %v414_v43 }
  0x18   : > { %4187 = vmatprep.subr.bf16.mxu0 %v4564_v3  ;;  %4195 = vmatprep.mubr.msk.bf16.mxu1 %vm4565_vm1, %v4564_v3  ;;  %s4571_s9 = smov 72   ;;  %s4572_s12 = smov 104   ;;  %v4575_v46 = vmov -1e+09   ;;  %vm957_vm7 = vcmask 195584   ;;  %vm3632_vm8 = vcmask 257024  }
  0x19   : > { %s4573_s13 = smov 56   ;;  %s4574_s15 = smov 64   ;;  %vm418_vm5 = vcmp.le.s32.totalorder %v417_v45, %v4761_v44 }
  0x1a   : > { %v419_v47 = vsel %vm418_vm5, 0.0, %v4575_v46  ;;  %s4576_s30 = smov 48   ;;  %s4577_s19 = smov 40  }
  0x1b   : > { %4188 = vmatpush3.bf16.msra.mxu0 %v4347_v4  ;;  %s4578_s18 = smov 8   ;;  %s4579_s20 = smov 16  }
  0x1c   : > { %4199 = vmatprep.subr.bf16.mxu0 %v4564_v3  ;;  %s4580_s14 = smov 24   ;;  %p4301_p5 = scmp.eq.s32.totalorder %s4635_s28, 1 }
  0x1e   : > { %4190 = vmatmul.mubr.msk.bf16.vlgmr.msra.gmra.mrb[0].mxu0 %vm451_vm2, %v420_v5 }
  0x1f   : > { %4201 = vmatprep.mubr.msk.bf16.mxu0 %vm4565_vm1, %v4564_v3 }
  0xf1   : > { %v489_v7 = vpop.f32.mrb[0].mxu0 }
  0xf2   : > { %v490_v8 = vadd.f32 %v3767_v6, %v489_v7  ;;  %v4191_v9 = vpop.f32.mrb[1].mxu0 }
  0xf3   : > { %v492_v10 = vpop.f32.mrb[2].mxu0 }
  0xf4   : > { %v493_v11 = vadd.f32 %v3767_v6, %v492_v10  ;;  %v4192_v12 = vpop.f32.mrb[3].mxu0  ;;  %v496_v13 = vmul.f32 0.35355338, %v490_v8 }
  0xf6   : > { %v497_v14 = vmul.f32 0.35355338, %v493_v11  ;;  %v4702_v15 = vpack.c.bf16 %v493_v11, %v490_v8 }
  0xf8   : > { %v498_v16 = vpack.c.bf16 %v497_v14, %v496_v13  ;;  %501 = vrot.lane.b32.xlu0 %v4702_v15, %s4566_s23  ;;  %v4709_v17 = vrot.slane %v4702_v15, 4 }
  0xfa   : > { %612 = vrot.lane.b32.xlu1 %v498_v16, %s4567_s25  ;;  %v959_v18 = vrot.slane %v498_v16, 4 }
  0xfc   : > { %614 = vrot.lane.b32.xlu0 %v4702_v15, %s4568_s26 }
  0xfe   : > { %724 = vrot.lane.b32.xlu1 %v4702_v15, %s4569_s29 }
 0x100   : > { %722 = vrot.lane.b32.xlu0 %v498_v16, %s4570_s11 }
 0x102   : > { %834 = vrot.lane.b32.xlu1 %v4702_v15, %s4571_s9 }
 0x104   : > { %832 = vrot.lane.b32.xlu0 %v498_v16, %s4572_s12 }
 0x106   : > { %961 = vrot.lane.b32.xlu1 %v4709_v17, %s4566_s23 }
 0x108   : > { %1071 = vrot.lane.b32.xlu0 %v4709_v17, %s4568_s26 }
 0x10a   : > { %1069 = vrot.lane.b32.xlu1 %v959_v18, %s4567_s25 }
 0x10c   : > { %1181 = vrot.lane.b32.xlu0 %v4709_v17, %s4569_s29 }
 0x10e   : > { %1179 = vrot.lane.b32.xlu1 %v959_v18, %s4570_s11 }
 0x110   : > { %1291 = vrot.lane.b32.xlu0 %v4709_v17, %s4571_s9 }
 0x112   : > { %1289 = vrot.lane.b32.xlu1 %v959_v18, %s4572_s12 }
 0x114   : > { %672 = vrot.lane.b32.xlu0 %v4702_v15, %s4573_s13 }
 0x116   : > { %560 = vrot.lane.b32.xlu1 %v4702_v15, %s4574_s15 }
 0x16a   : > { %v502_v19 = vpop.permute.xlu0 %501 }
 0x16b   : > { %v508_v20 = vsel %vm503_vm3, %v502_v19, 0 }
 0x16c   : > { %4194 = vmatpush3.bf16.xpose.msra.mxu1 %v508_v20  ;;  %v613_v21 = vpop.permute.xlu1 %612 }
 0x16d   : > { %4205 = vmatprep.subr.bf16.mxu1 %v4564_v3 }
 0x16e   : > { %v615_v22 = vpop.permute.xlu0 %614 }
 0x16f   : > { %v620_v24 = vsel %vm503_vm3, %v615_v22, 0 }
 0x170   : > { %v725_v23 = vpop.permute.xlu1 %724 }
 0x171   : > { %v730_v27 = vsel %vm503_vm3, %v725_v23, 0 }
 0x172   : > { %v723_v30 = vpop.permute.xlu0 %722 }
 0x173   : > { %4196 = vmatmul.mubr.msk.bf16.vlgmr.msra.gmra.mrb[0].mxu1 %vm503_vm3, %v498_v16 }
 0x174   : > { %v835_v25 = vpop.permute.xlu1 %834  ;;  %4206 = vmatpush3.bf16.xpose.msra.mxu1 %v620_v24  ;;  %4207 = vmatprep.mubr.msk.bf16.mxu1 %vm4565_vm1, %v4564_v3 }
 0x175   : > { %4217 = vmatprep.subr.bf16.mxu1 %v4564_v3  ;;  %v840_v31 = vsel %vm503_vm3, %v835_v25, 0 }
 0x176   : > { %v833_v35 = vpop.permute.xlu0 %832 }
 0x178   : > { %v962_v26 = vpop.permute.xlu1 %961 }
 0x179   : > { %v967_v36 = vsel %vm503_vm3, %v962_v26, 0 }
 0x17a   : > { %v1072_v37 = vpop.permute.xlu0 %1071 }
 0x17b   : > { %4208 = vmatmul.mubr.msk.bf16.vlgmr.msra.gmra.mrb[4].mxu1 %vm503_vm3, %v613_v21  ;;  %v1077_v38 = vsel %vm503_vm3, %v1072_v37, 0 }
 0x17c   : > { %v1070_v28 = vpop.permute.xlu1 %1069  ;;  %4218 = vmatpush3.bf16.xpose.msra.mxu1 %v730_v27  ;;  %4219 = vmatprep.mubr.msk.bf16.mxu1 %vm4565_vm1, %v4564_v3 }
 0x17d   : > { %4229 = vmatprep.subr.bf16.mxu1 %v4564_v3 }
 0x17e   : > { %v1182_v39 = vpop.permute.xlu0 %1181 }
 0x17f   : > { %v1187_v40 = vsel %vm503_vm3, %v1182_v39, 0 }
 0x180   : > { %v1180_v29 = vpop.permute.xlu1 %1179 }
 0x182   : > { %v1292_v41 = vpop.permute.xlu0 %1291 }
 0x183   : > { %4220 = vmatmul.mubr.msk.bf16.vlgmr.msra.gmra.mrb[8].mxu1 %vm503_vm3, %v723_v30  ;;  %v1297_v42 = vsel %vm503_vm3, %v1292_v41, 0 }
 0x184   : > { %v1290_v32 = vpop.permute.xlu1 %1289  ;;  %4230 = vmatpush3.bf16.xpose.msra.mxu1 %v840_v31  ;;  %4231 = vmatprep.mubr.msk.bf16.mxu1 %vm4565_vm1, %v4564_v3 }
 0x185   : > { %4241 = vmatprep.subr.bf16.mxu1 %v4564_v3 }
 0x188   : > { %v561_v33 = vpop.permute.xlu1 %560 }
 0x189   : > { %v567_v34 = vsel %vm565_vm4, %v561_v33, 0 }
 0x18a   : > { %4200 = vmatpush3.bf16.msra.mxu0 %v567_v34  ;;  %v673_v34 = vpop.permute.xlu0 %672 }
 0x18b   : > { %4232 = vmatmul.mubr.msk.bf16.vlgmr.msra.gmra.mrb[12].mxu1 %vm503_vm3, %v833_v35  ;;  %4211 = vmatprep.subr.bf16.mxu0 %v4564_v3  ;;  %v678_v43 = vsel %vm565_vm4, %v673_v34, 0 }
 0x18c   : > { %4242 = vmatpush3.bf16.xpose.msra.mxu1 %v967_v36  ;;  %4243 = vmatprep.mubr.msk.bf16.mxu1 %vm4565_vm1, %v4564_v3 }
 0x18d   : > { %4253 = vmatprep.subr.bf16.mxu1 %v4564_v3 }
 0x193   : > { %4244 = vmatmul.mubr.msk.bf16.vlgmr.msra.gmra.mrb[16].mxu1 %vm503_vm3, %v959_v18 }
 0x194   : > { %4254 = vmatpush3.bf16.xpose.msra.mxu1 %v1077_v38  ;;  %4255 = vmatprep.mubr.msk.bf16.mxu1 %vm4565_vm1, %v4564_v3 }
 0x195   : > { %4265 = vmatprep.subr.bf16.mxu1 %v4564_v3 }
 0x19b   : > { %4256 = vmatmul.mubr.msk.bf16.vlgmr.msra.gmra.mrb[20].mxu1 %vm503_vm3, %v1070_v28 }
 0x19c   : > { %4266 = vmatpush3.bf16.xpose.msra.mxu1 %v1187_v40  ;;  %4267 = vmatprep.mubr.msk.bf16.mxu1 %vm4565_vm1, %v4564_v3 }
 0x19d   : > { %4277 = vmatprep.subr.bf16.mxu1 %v4564_v3 }
 0x1a3   : > { %4268 = vmatmul.mubr.msk.bf16.vlgmr.msra.gmra.mrb[24].mxu1 %vm503_vm3, %v1180_v29 }
 0x1a4   : > { %4278 = vmatpush3.bf16.xpose.msra.mxu1 %v1297_v42  ;;  %4279 = vmatprep.mubr.msk.bf16.mxu1 %vm4565_vm1, %v4564_v3 }
 0x1a5   : > { %4289 = vmatprep.subr.bf16.mxu1 %v4564_v3 }
 0x1ab   : > { %4280 = vmatmul.mubr.msk.bf16.vlgmr.msra.gmra.mrb[28].mxu1 %vm503_vm3, %v1290_v32 }
 0x1ac   : > { %4293 = vmatprep.mubr.msk.bf16.mxu1 %vm4565_vm1, %v4564_v3 }
 0x246   : > { %v544_v48 = vpop.f32.mrb[0].mxu1 }
 0x247   : > { %v4764_v49 = vadd.f32 %v544_v48, %v419_v47  ;;  %v4197_v50 = vpop.f32.mrb[1].mxu1 }
 0x248   : > { %v547_v51 = vpop.f32.mrb[2].mxu1 }
 0x249   : > { %v4198_v52 = vpop.f32.mrb[3].mxu1  ;;  %v550_v53 = vsel %vm503_vm3, %v4764_v49, -inf }
 0x24a   : > { %551 = vmax.xlane.f32.xlu0 %v550_v53 }
 0x24e   : > { %v656_v54 = vpop.f32.mrb[4].mxu1 }
 0x24f   : > { %v4768_v55 = vadd.f32 %v656_v54, %v419_v47  ;;  %v4209_v56 = vpop.f32.mrb[5].mxu1 }
 0x250   : > { %v659_v57 = vpop.f32.mrb[6].mxu1 }
 0x251   : > { %v4210_v58 = vpop.f32.mrb[7].mxu1  ;;  %v662_v59 = vsel %vm503_vm3, %v4768_v55, -inf }
 0x252   : > { %663 = vmax.xlane.f32.xlu1 %v662_v59 }
 0x256   : > { %v766_v60 = vpop.f32.mrb[8].mxu1 }
 0x257   : > { %v4221_v61 = vpop.f32.mrb[9].mxu1  ;;  %v767_v20 = vadd.f32 %v766_v60, %v419_v47 }
 0x258   : > { %v769_v62 = vpop.f32.mrb[10].mxu1 }
 0x259   : > { %v4222_v63 = vpop.f32.mrb[11].mxu1  ;;  %v772_v23 = vsel %vm503_vm3, %v767_v20, -inf }
 0x25e   : > { %v876_v0 = vpop.f32.mrb[12].mxu1 }
 0x25f   : > { %v4233_v1 = vpop.f32.mrb[13].mxu1  ;;  %v877_v21 = vadd.f32 %v876_v0, %v419_v47 }
 0x260   : > { %782 = vrot.lane.b32.xlu0 %v4702_v15, %s4576_s30  ;;  %v879_v2 = vpop.f32.mrb[14].mxu1 }
 0x261   : > { %v4234_v4 = vpop.f32.mrb[15].mxu1  ;;  %v882_v29 = vsel %vm503_vm3, %v877_v21, -inf }
 0x263   : > { %892 = vrot.lane.b32.xlu1 %v4702_v15, %s4577_s19 }
 0x266   : > { %v1003_v5 = vpop.f32.mrb[16].mxu1 }
 0x267   : > { %v4245_v6 = vpop.f32.mrb[17].mxu1  ;;  %v1004_v27 = vadd.f32 %v1003_v5, %v419_v47 }
 0x268   : > { %v1006_v7 = vpop.f32.mrb[18].mxu1 }
 0x269   : > { %v4246_v8 = vpop.f32.mrb[19].mxu1  ;;  %v1009_v30 = vsel %vm503_vm3, %v1004_v27, -inf }
 0x26e   : > { %v1113_v9 = vpop.f32.mrb[20].mxu1 }
 0x26f   : > { %v4257_v10 = vpop.f32.mrb[21].mxu1  ;;  %v1114_v28 = vadd.f32 %v1113_v9, %v419_v47 }
 0x270   : > { %v1116_v11 = vpop.f32.mrb[22].mxu1 }
 0x271   : > { %v4258_v12 = vpop.f32.mrb[23].mxu1  ;;  %v1119_v31 = vsel %vm503_vm3, %v1114_v28, -inf }
 0x276   : > { %v1223_v13 = vpop.f32.mrb[24].mxu1 }
 0x277   : > { %v4776_v14 = vadd.f32 %v1223_v13, %v419_v47  ;;  %v4269_v16 = vpop.f32.mrb[25].mxu1 }
 0x278   : > { %v1226_v18 = vpop.f32.mrb[26].mxu1 }
 0x279   : > { %v4270_v19 = vpop.f32.mrb[27].mxu1  ;;  %v1229_v32 = vsel %vm503_vm3, %v4776_v14, -inf }
 0x27e   : > { %v1333_v22 = vpop.f32.mrb[28].mxu1 }
 0x27f   : > { %v4779_v15 = vadd.f32 %v1333_v22, %v419_v47  ;;  %773 = vmax.xlane.f32.xlu0 %v772_v23  ;;  %v4281_v24 = vpop.f32.mrb[29].mxu1 }
 0x280   : > { %v1336_v25 = vpop.f32.mrb[30].mxu1 }
 0x281   : > { %v4282_v26 = vpop.f32.mrb[31].mxu1  ;;  %v1339_v33 = vsel %vm503_vm3, %v4779_v15, -inf }
 0x283   : > { %883 = vmax.xlane.f32.xlu0 %v882_v29 }
 0x287   : > { %1010 = vmax.xlane.f32.xlu0 %v1009_v30  ;;  %1120 = vmax.xlane.f32.xlu1 %v1119_v31 }
 0x28b   : > { %1230 = vmax.xlane.f32.xlu0 %v1229_v32 }
 0x28f   : > { %1340 = vmax.xlane.f32.xlu0 %v1339_v33 }
 0x298   : > { %1129 = vrot.lane.b32.xlu1 %v4709_v17, %s4573_s13 }
 0x29c   : > { %1239 = vrot.lane.b32.xlu1 %v4709_v17, %s4576_s30 }
 0x2a0   : > { %1349 = vrot.lane.b32.xlu1 %v4709_v17, %s4577_s19 }
 0x2a5   : > { %1019 = vrot.lane.b32.xlu0 %v4709_v17, %s4574_s15 }
 0x2d7   : > { %v552_v35 = vpop.xlane.xlu0 %551 }
 0x2d8   : > { %v553_v36 = vsub.f32 %v4764_v49, %v552_v35 }
 0x2da   : > { %v554_v37 = vmul.f32 1.442695, %v553_v36 }
 0x2db   : > { %v783_v45 = vpop.permute.xlu0 %782 }
 0x2dc   : > { %4480 = vpow2.f32 %v554_v37  ;;  %v788_v48 = vsel %vm565_vm4, %v783_v45, 0 }
 0x2df   : > { %v664_v38 = vpop.xlane.xlu1 %663 }
 0x2e0   : > { %v665_v39 = vsub.f32 %v4768_v55, %v664_v38 }
 0x2e2   : > { %v666_v40 = vmul.f32 1.442695, %v665_v39 }
 0x2e3   : > { %v893_v52 = vpop.permute.xlu1 %892 }
 0x2e4   : > { %4482 = vpow2.f32 %v666_v40  ;;  %v898_v7 = vsel %vm565_vm4, %v893_v52, 0 }
 0x2e6   : > { %v4481_v41 = vpop.eup %4480 }
 0x2e7   : > { %v559_v42 = vpack.c.bf16 %v4481_v41, %v4481_v41  ;;  %v556_v13 = vsel %vm503_vm3, %v4481_v41, 0.0 }
 0x2e9   : > { %4202 = vmatmul.mubr.msk.bf16.vlgmr.msra.gmra.mrb[4].mxu0 %vm503_vm3, %v559_v42 }
 0x2ea   : > { %4212 = vmatpush3.bf16.msra.mxu0 %v678_v43  ;;  %4213 = vmatprep.mubr.msk.bf16.mxu0 %vm4565_vm1, %v4564_v3 }
 0x2eb   : > { %4223 = vmatprep.subr.bf16.mxu0 %v4564_v3 }
 0x2ee   : > { %v4483_v17 = vpop.eup %4482 }
 0x2ef   : > { %v668_v46 = vsel %vm503_vm3, %v4483_v17, 0.0  ;;  %v671_v47 = vpack.c.bf16 %v4483_v17, %v4483_v17 }
 0x2f0   : > { %669 = vadd.xlane.f32.xlu1 %v668_v46 }
 0x2f1   : > { %4214 = vmatmul.mubr.msk.bf16.vlgmr.msra.gmra.mrb[8].mxu0 %vm503_vm3, %v671_v47 }
 0x2f2   : > { %4224 = vmatpush3.bf16.msra.mxu0 %v788_v48  ;;  %4225 = vmatprep.mubr.msk.bf16.mxu0 %vm4565_vm1, %v4564_v3 }
 0x2f3   : > { %4235 = vmatprep.subr.bf16.mxu0 %v4564_v3 }
 0x30c   : > { %v774_v49 = vpop.xlane.xlu0 %773 }
 0x30d   : > { %v775_v50 = vsub.f32 %v767_v20, %v774_v49 }
 0x30f   : > { %v776_v51 = vmul.f32 1.442695, %v775_v50 }
 0x310   : > { %v884_v53 = vpop.xlane.xlu0 %883 }
 0x311   : > { %4484 = vpow2.f32 %v776_v51  ;;  %v885_v54 = vsub.f32 %v877_v21, %v884_v53 }
 0x313   : > { %v886_v55 = vmul.f32 1.442695, %v885_v54 }
 0x314   : > { %v1011_v56 = vpop.xlane.xlu0 %1010  ;;  %v1121_v57 = vpop.xlane.xlu1 %1120 }
 0x315   : > { %4486 = vpow2.f32 %v886_v55  ;;  %v1122_v58 = vsub.f32 %v1114_v28, %v1121_v57  ;;  %v1012_v59 = vsub.f32 %v1004_v27, %v1011_v56 }
 0x317   : > { %v1123_v60 = vmul.f32 1.442695, %v1122_v58  ;;  %v1013_v0 = vmul.f32 1.442695, %v1012_v59 }
 0x318   : > { %v1231_v61 = vpop.xlane.xlu0 %1230  ;;  %v1130_v23 = vpop.permute.xlu1 %1129 }
 0x319   : > { %v1232_v62 = vsub.f32 %v4776_v14, %v1231_v61  ;;  %4488 = vpow2.f32 %v1123_v60  ;;  %v1135_v25 = vsel %vm565_vm4, %v1130_v23, 0 }
 0x31b   : > { %v4485_v63 = vpop.eup %4484  ;;  %v1233_v1 = vmul.f32 1.442695, %v1232_v62 }
 0x31c   : > { %v1341_v2 = vpop.xlane.xlu0 %1340  ;;  %v778_v4 = vsel %vm503_vm3, %v4485_v63, 0.0  ;;  %v781_v5 = vpack.c.bf16 %v4485_v63, %v4485_v63  ;;  %v1240_v27 = vpop.permute.xlu1 %1239 }
 0x31d   : > { %4490 = vpow2.f32 %v1233_v1  ;;  %v1342_v6 = vsub.f32 %v4779_v15, %v1341_v2  ;;  %779 = vadd.xlane.f32.xlu1 %v778_v4  ;;  %v1245_v29 = vsel %vm565_vm4, %v1240_v27, 0  ;;  %v4349_v2 = vld [vmem:[%s4654_s17] sm:$0xff]  }
 0x31e   : > { %4226 = vmatmul.mubr.msk.bf16.vlgmr.msra.gmra.mrb[12].mxu0 %vm503_vm3, %v781_v5  ;;  %4492 = vpow2.f32 %v1013_v0  ;;  %4290 = vmatpush3.bf16.msra.mxu1 %v4349_v2 }
 0x31f   : > { %v4487_v8 = vpop.eup %4486  ;;  %v1343_v9 = vmul.f32 1.442695, %v1342_v6  ;;  %4236 = vmatpush3.bf16.msra.mxu0 %v898_v7  ;;  %4237 = vmatprep.mubr.msk.bf16.mxu0 %vm4565_vm1, %v4564_v3 }
 0x320   : > { %v888_v10 = vsel %vm503_vm3, %v4487_v8, 0.0  ;;  %4247 = vmatprep.subr.bf16.mxu0 %v4564_v3  ;;  %v1020_v11 = vpop.permute.xlu0 %1019  ;;  %v891_v14 = vpack.c.bf16 %v4487_v8, %v4487_v8  ;;  %v1350_v30 = vpop.permute.xlu1 %1349  ;;  %4291 = vmatprep.subr.bf16.mxu1 %v4564_v3 }
 0x321   : > { %4494 = vpow2.f32 %v1343_v9  ;;  %889 = vadd.xlane.f32.xlu1 %v888_v10  ;;  %v1025_v18 = vsel %vm565_vm4, %v1020_v11, 0  ;;  %v1355_v32 = vsel %vm565_vm4, %v1350_v30, 0 }
 0x323   : > { %v4489_v12 = vpop.eup %4488 }
 0x324   : > { %v1125_v16 = vsel %vm503_vm3, %v4489_v12, 0.0  ;;  %v1128_v28 = vpack.c.bf16 %v4489_v12, %v4489_v12 }
 0x325   : > { %557 = vadd.xlane.f32.xlu1 %v556_v13  ;;  %1126 = vadd.xlane.f32.xlu0 %v1125_v16  ;;  %v4350_v13 = vld [vmem:[%s4654_s17 + $0x8] sm:$0xff]   ;;  %s4582_s17 = smov [#allocation2]  }
 0x326   : > { %4238 = vmatmul.mubr.msk.bf16.vlgmr.msra.gmra.mrb[16].mxu0 %vm503_vm3, %v891_v14  ;;  %4292 = vmatpush3.bf16.msra.mxu1 %v4350_v13 }
 0x327   : > { %v4491_v19 = vpop.eup %4490  ;;  %4248 = vmatpush3.bf16.msra.mxu0 %v1025_v18  ;;  %4249 = vmatprep.mubr.msk.bf16.mxu0 %vm4565_vm1, %v4564_v3 }
 0x328   : > { %v1235_v20 = vsel %vm503_vm3, %v4491_v19, 0.0  ;;  %4259 = vmatprep.subr.bf16.mxu0 %v4564_v3  ;;  %v4493_v21 = vpop.eup %4492  ;;  %v1238_v31 = vpack.c.bf16 %v4491_v19, %v4491_v19 }
 0x329   : > { %1236 = vadd.xlane.f32.xlu0 %v1235_v20  ;;  %v1018_v24 = vpack.c.bf16 %v4493_v21, %v4493_v21  ;;  %v1015_v26 = vsel %vm503_vm3, %v4493_v21, 0.0 }
 0x32b   : > { %v4495_v22 = vpop.eup %4494 }
 0x32c   : > { %v1345_v15 = vsel %vm503_vm3, %v4495_v22, 0.0  ;;  %v1348_v33 = vpack.c.bf16 %v4495_v22, %v4495_v22 }
 0x32d   : > { %1346 = vadd.xlane.f32.xlu0 %v1345_v15 }
 0x32e   : > { %4250 = vmatmul.mubr.msk.bf16.vlgmr.msra.gmra.mrb[20].mxu0 %vm503_vm3, %v1018_v24 }
 0x32f   : > { %4260 = vmatpush3.bf16.msra.mxu0 %v1135_v25  ;;  %4261 = vmatprep.mubr.msk.bf16.mxu0 %vm4565_vm1, %v4564_v3 }
 0x330   : > { %4271 = vmatprep.subr.bf16.mxu0 %v4564_v3 }
 0x331   : > { %1016 = vadd.xlane.f32.xlu0 %v1015_v26 }
 0x336   : > { %4262 = vmatmul.mubr.msk.bf16.vlgmr.msra.gmra.mrb[24].mxu0 %vm503_vm3, %v1128_v28 }
 0x337   : > { %4272 = vmatpush3.bf16.msra.mxu0 %v1245_v29  ;;  %4273 = vmatprep.mubr.msk.bf16.mxu0 %vm4565_vm1, %v4564_v3 }
 0x338   : > { %4283 = vmatprep.subr.bf16.mxu0 %v4564_v3 }
 0x33e   : > { %4274 = vmatmul.mubr.msk.bf16.vlgmr.msra.gmra.mrb[28].mxu0 %vm503_vm3, %v1238_v31 }
 0x33f   : > { %4284 = vmatpush3.bf16.msra.mxu0 %v1355_v32  ;;  %4285 = vmatprep.mubr.msk.bf16.mxu0 %vm4565_vm1, %v4564_v3 }
 0x346   : > { %4286 = vmatmul.mubr.msk.bf16.vlgmr.msra.gmra.mrb[32].mxu0 %vm503_vm3, %v1348_v33 }
 0x37d   : > { %v670_v48 = vpop.xlane.xlu1 %669 }
 0x37e   : > { %4496 = vrcp.f32 %v670_v48 }
 0x388   : > { %v4497_v58 = vpop.eup %4496 }
 0x3aa   : > { %v780_v54 = vpop.xlane.xlu1 %779 }
 0x3ae   : > { %v890_v0 = vpop.xlane.xlu1 %889 }
 0x3b2   : > { %v1127_v50 = vpop.xlane.xlu0 %1126  ;;  %v558_v26 = vpop.xlane.xlu1 %557 }
 0x3b3   : > { %4498 = vrcp.f32 %v1127_v50 }
 0x3b4   : > { %4500 = vrcp.f32 %v780_v54 }
 0x3b6   : > { %v1237_v56 = vpop.xlane.xlu0 %1236 }
 0x3b7   : > { %4502 = vrcp.f32 %v1237_v56 }
 0x3b8   : > { %4504 = vrcp.f32 %v890_v0 }
 0x3ba   : > { %v1347_v4 = vpop.xlane.xlu0 %1346 }
 0x3bb   : > { %4506 = vrcp.f32 %v1347_v4 }
 0x3bc   : > { %v4843_v34 = vpop.f32.mrb[4].mxu0  ;;  %4508 = vrcp.f32 %v558_v26 }
 0x3bd   : > { %v4203_v35 = vpop.f32.mrb[5].mxu0  ;;  %v4499_v59 = vpop.eup %4498 }
 0x3be   : > { %v606_v36 = vpop.f32.mrb[6].mxu0  ;;  %v4501_v7 = vpop.eup %4500 }
 0x3bf   : > { %v4204_v37 = vpop.f32.mrb[7].mxu0  ;;  %v1017_v27 = vpop.xlane.xlu0 %1016 }
 0x3c0   : > { %4510 = vrcp.f32 %v1017_v27 }
 0x3c1   : > { %v4503_v8 = vpop.eup %4502 }
 0x3c2   : > { %v4505_v19 = vpop.eup %4504 }
 0x3c4   : > { %v714_v38 = vpop.f32.mrb[8].mxu0 }
 0x3c5   : > { %v4215_v39 = vpop.f32.mrb[9].mxu0  ;;  %v721_v61 = vmul.f32 %v4497_v58, %v714_v38  ;;  %v4507_v20 = vpop.eup %4506 }
 0x3c6   : > { %v717_v40 = vpop.f32.mrb[10].mxu0  ;;  %v4509_v30 = vpop.eup %4508 }
 0x3c7   : > { %v4216_v41 = vpop.f32.mrb[11].mxu0  ;;  %v610_v37 = vmul.f32 %v4509_v30, %v4843_v34  ;;  %v4856_v34 = vsub.s32 0, %v4761_v44 }
 0x3ca   : > { %v4511_v33 = vpop.eup %4510 }
 0x3f1   : > { %v824_v42 = vpop.f32.mrb[12].mxu0 }
 0x3f2   : > { %v4227_v43 = vpop.f32.mrb[13].mxu0  ;;  %v831_v10 = vmul.f32 %v4501_v7, %v824_v42 }
 0x3f3   : > { %v827_v17 = vpop.f32.mrb[14].mxu0 }
 0x3f4   : > { %v4228_v45 = vpop.f32.mrb[15].mxu0 }
 0x3f9   : > { %v934_v46 = vpop.f32.mrb[16].mxu0 }
 0x3fa   : > { %v4239_v47 = vpop.f32.mrb[17].mxu0  ;;  %v941_v22 = vmul.f32 %v4505_v19, %v934_v46  ;;  %v4868_v19 = vsub.s32 1, %v4761_v44 }
 0x3fb   : > { %v937_v49 = vpop.f32.mrb[18].mxu0 }
 0x3fc   : > { %v4240_v51 = vpop.f32.mrb[19].mxu0  ;;  %v4859_v49 = vld [vmem:[%s4677_s16] sm:$0xff] }
 0x3fd   : > { %v1422_v50 = vrot.slane %v4859_v49, %v4856_v34  ;;  %v4524_v51 = vld [vmem:[#allocation2] sm:$0xff]  }
 0x3fe   : > { %v423_v56 = vunpack.c.h.bf16 %v4524_v51 }
 0x401   : > { %v4845_v52 = vpop.f32.mrb[20].mxu0 }
 0x402   : > { %v4251_v53 = vpop.f32.mrb[21].mxu0  ;;  %v1068_v38 = vmul.f32 %v4511_v33, %v4845_v52  ;;  %v422_v52 = vunpack.c.l.bf16 %v4524_v51  ;;  %v1575_v51 = vld [vmem:[%s4665_s24 + $0x80] sm:$0xff] }
 0x403   : > { %v1064_v55 = vpop.f32.mrb[22].mxu0 }
 0x404   : > { %v4252_v57 = vpop.f32.mrb[23].mxu0 }
 0x409   : > { %v1171_v60 = vpop.f32.mrb[24].mxu0 }
 0x40a   : > { %v1178_v62 = vmul.f32 %v4499_v59, %v1171_v60  ;;  %v4263_v63 = vpop.f32.mrb[25].mxu0 }
 0x40b   : > { %v1174_v1 = vpop.f32.mrb[26].mxu0 }
 0x40c   : > { %v4331_v5 = vpack.i.bf16 %v1178_v62, %v721_v61  ;;  %v4264_v6 = vpop.f32.mrb[27].mxu0 }
 0x40e   : > { %4332 = vrot.lane.b32.xlu1 %v4331_v5, %s4578_s18 }
 0x411   : > { %v1281_v9 = vpop.f32.mrb[28].mxu0 }
 0x412   : > { %v1288_v11 = vmul.f32 %v4503_v8, %v1281_v9  ;;  %v4275_v12 = vpop.f32.mrb[29].mxu0 }
 0x413   : > { %v1284_v14 = vpop.f32.mrb[30].mxu0 }
 0x414   : > { %v4336_v16 = vpack.i.bf16 %v1288_v11, %v831_v10  ;;  %v4276_v18 = vpop.f32.mrb[31].mxu0 }
 0x416   : > { %4337 = vrot.lane.b32.xlu0 %v4336_v16, %s4579_s20 }
 0x419   : > { %v1391_v21 = vpop.f32.mrb[32].mxu0 }
 0x41a   : > { %v1398_v23 = vmul.f32 %v4507_v20, %v1391_v21  ;;  %v4287_v3 = vpop.f32.mrb[33].mxu0  ;;  %v4871_v20 = vsub.s32 2, %v4761_v44  ;;  %v1511_v21 = vrot.slane %v4859_v49, %v4868_v19 }
 0x41b   : > { %v1394_v15 = vpop.f32.mrb[34].mxu0 }
 0x41c   : > { %v4341_v24 = vpack.i.bf16 %v1398_v23, %v941_v22  ;;  %v4288_v25 = vpop.f32.mrb[35].mxu0  ;;  %v1517_v3 = vrot.slane %v4859_v49, %v4871_v20 }
 0x41e   : > { %4342 = vrot.lane.b32.xlu1 %v4341_v24, %s4580_s14 }
 0x480   : > { %v4333_v28 = vpop.permute.xlu1 %4332 }
 0x481   : > { %v4335_v31 = vunpack.i.h.bf16 %v4333_v28  ;;  %v4334_v32 = vunpack.i.l.bf16 %v4333_v28 }
 0x483   : > { %v954_v40 = vsel %vm503_vm3, %v610_v37, %v4334_v32  ;;  %v1411_v41 = vsel %vm503_vm3, %v1068_v38, %v4335_v31 }
 0x488   : > { %v4338_v29 = vpop.permute.xlu0 %4337 }
 0x489   : > { %v4340_v35 = vunpack.i.h.bf16 %v4338_v29  ;;  %v4339_v36 = vunpack.i.l.bf16 %v4338_v29 }
 0x48b   : > { %v1412_v17 = vsel %vm955_vm6, %v1411_v41, %v4340_v35  ;;  %v956_v45 = vsel %vm955_vm6, %v954_v40, %v4339_v36 }
 0x490   : > { %v4343_v39 = vpop.permute.xlu1 %4342 }
 0x491   : > { %v4345_v42 = vunpack.i.h.bf16 %v4343_v39  ;;  %v4344_v43 = vunpack.i.l.bf16 %v4343_v39 }
 0x493   : > { %v958_v46 = vsel %vm957_vm7, %v956_v45, %v4344_v43  ;;  %v1413_v47 = vsel %vm957_vm7, %v1412_v17, %v4345_v42  ;;  %v1559_v42 = vld [vmem:[%s4665_s24] sm:$0xff]  ;;  %v1560_v17 = vld [vmem:[%s4665_s24 + $0x8] sm:$0xff] }
 0x494   : > { %v1414_v48 = vpack.c.bf16 %v1413_v47, %v958_v46  ;;  %v1567_v43 = vld [vmem:[%s4665_s24 + $0x40] sm:$0xff]  ;;  %v1568_v46 = vld [vmem:[%s4665_s24 + $0x48] sm:$0xff] }
 0x495   : > { %v3792_v45 = vcombine.high %v1559_v42, %v1567_v43  ;;  %v3791_v47 = vcombine.low %v1559_v42, %v1567_v43  ;;  %v1580_v42 = vld [vmem:[%s4665_s24 + $0xa8] sm:$0xff] }
 0x496   : > { %4294 = vmatmul.mubr.msk.bf16.vlgmr.msra.gmra.mrb[32].mxu1 %vm451_vm2, %v1414_v48  ;;  %v3793_v48 = vcombine.low %v1560_v17, %v1568_v46  ;;  %v1588_v43 = vld [vmem:[%s4665_s24 + $0xe8] sm:$0xff] }
 0x497   : > { %1836 = vmatprep.subr.bf16.mxu0 %v3792_v45 }
 0x498   : > { %1837 = vmatpush1.bf16.msra.mxu0 %v3791_v47  ;;  %v3818_v47 = vcombine.high %v1580_v42, %v1588_v43 }
 0x569   : > { %v1472_v53 = vpop.f32.mrb[32].mxu1 }
 0x56a   : > { %v1473_v54 = vadd.f32 %v1472_v53, %v1422_v50  ;;  %v4295_v55 = vpop.f32.mrb[33].mxu1  ;;  %v1576_v53 = vld [vmem:[%s4665_s24 + $0x88] sm:$0xff] }
 0x56b   : > { %v1475_v57 = vpop.f32.mrb[34].mxu1  ;;  %v1584_v55 = vld [vmem:[%s4665_s24 + $0xc8] sm:$0xff] }
 0x56c   : > { %v1476_v58 = vadd.f32 %v1475_v57, %v1422_v50  ;;  %v4296_v59 = vpop.f32.mrb[35].mxu1  ;;  %v1479_v60 = vadd.f32 %v1473_v54, %v422_v52  ;;  %v3794_v50 = vcombine.high %v1560_v17, %v1568_v46  ;;  %v1583_v52 = vld [vmem:[%s4665_s24 + $0xc0] sm:$0xff]  ;;  %v3809_v57 = vcombine.low %v1576_v53, %v1584_v55 }
 0x56d   : > { %v3808_v54 = vcombine.high %v1575_v51, %v1583_v52  ;;  %v1561_v59 = vld [vmem:[%s4665_s24 + $0x10] sm:$0xff] }
 0x56e   : > { %v1481_v61 = vsel %vm451_vm2, %v1479_v60, 0.0  ;;  %v1480_v62 = vadd.f32 %v1476_v58, %v423_v56  ;;  %1879 = vmatprep.subr.bf16.mxu1 %v3794_v50  ;;  %v3807_v56 = vcombine.low %v1575_v51, %v1583_v52  ;;  %v3810_v58 = vcombine.high %v1576_v53, %v1584_v55  ;;  %v1573_v50 = vld [vmem:[%s4665_s24 + $0x70] sm:$0xff]  ;;  %v1566_v51 = vld [vmem:[%s4665_s24 + $0x38] sm:$0xff] }
 0x56f   : > { %1482 = vadd.xlane.f32.xlu1 %v1481_v61  ;;  %1880 = vmatpush1.bf16.msra.mxu1 %v3793_v48  ;;  %v1562_v61 = vld [vmem:[%s4665_s24 + $0x18] sm:$0xff]  ;;  %v1565_v48 = vld [vmem:[%s4665_s24 + $0x30] sm:$0xff] }
 0x570   : > { %v1484_v63 = vsel %vm451_vm2, %v1480_v62, 0.0  ;;  %1838 = vmatprep.subr.bf16.mxu0 %v3808_v54  ;;  %1881 = vmatprep.subr.bf16.mxu1 %v3810_v58  ;;  %v1574_v52 = vld [vmem:[%s4665_s24 + $0x78] sm:$0xff]  ;;  %v3817_v54 = vcombine.low %v1580_v42, %v1588_v43  ;;  %v3804_v55 = vcombine.high %v1565_v48, %v1573_v50  ;;  %v1589_v58 = vld [vmem:[%s4665_s24 + $0xf0] sm:$0xff]  ;;  %v4383_v42 = vld [vmem:[%s4671_s10 + $0x140] sm:$0xff]  }
 0x571   : > { %1485 = vadd.xlane.f32.xlu0 %v1484_v63  ;;  %1839 = vmatpush1.bf16.msra.mxu0 %v3807_v56  ;;  %v3806_v56 = vcombine.high %v1566_v51, %v1574_v52  ;;  %v4384_v43 = vld [vmem:[%s4671_s10 + $0x1c0] sm:$0xff]  }
 0x573   : > { %1882 = vmatpush1.bf16.msra.mxu1 %v3809_v57  ;;  %v1581_v57 = vld [vmem:[%s4665_s24 + $0xb0] sm:$0xff] }
 0x5fc   : > { %v1483_v0 = vpop.xlane.xlu1 %1482 }
 0x5fd   : > { %v1488_v1 = vmul.f32 0.03125, %v1483_v0  ;;  %v1570_v0 = vld [vmem:[%s4665_s24 + $0x58] sm:$0xff] }
 0x5fe   : > { %v1486_v2 = vpop.xlane.xlu0 %1485 }
 0x5ff   : > { %v1490_v4 = vsub.f32 %v1479_v60, %v1488_v1  ;;  %v1489_v5 = vmul.f32 0.03125, %v1486_v2  ;;  %v1569_v60 = vld [vmem:[%s4665_s24 + $0x50] sm:$0xff]  ;;  %v3797_v2 = vcombine.low %v1562_v61, %v1570_v0 }
 0x600   : > { %v3796_v63 = vcombine.high %v1561_v59, %v1569_v60  ;;  %v3795_v1 = vcombine.low %v1561_v59, %v1569_v60  ;;  %v1582_v59 = vld [vmem:[%s4665_s24 + $0xb8] sm:$0xff] }
 0x601   : > { %v1491_v6 = vsub.f32 %v1480_v62, %v1489_v5  ;;  %v1492_v7 = vmul.f32 %v1490_v4, %v1490_v4  ;;  %v4581_v62 = vmov 0   ;;  %v1590_v60 = vld [vmem:[%s4665_s24 + $0xf8] sm:$0xff] }
 0x602   : > { %1868 = vmatprep.mubr.bf16.mxu0 %v4581_v62  ;;  %1911 = vmatprep.mubr.bf16.mxu1 %v4581_v62 }
 0x603   : > { %v1494_v8 = vsel %vm451_vm2, %v1492_v7, 0.0  ;;  %v1493_v9 = vmul.f32 %v1491_v6, %v1491_v6  ;;  %1922 = vmatprep.subr.bf16.mxu0 %v3796_v63  ;;  %v3805_v63 = vcombine.low %v1566_v51, %v1574_v52 }
 0x604   : > { %1495 = vadd.xlane.f32.xlu0 %v1494_v8 }
 0x605   : > { %v1497_v10 = vsel %vm451_vm2, %v1493_v9, 0.0 }
 0x606   : > { %1498 = vadd.xlane.f32.xlu1 %v1497_v10 }
 0x691   : > { %v1496_v11 = vpop.xlane.xlu0 %1495 }
 0x692   : > { %v1500_v12 = vmul.f32 0.03125, %v1496_v11  ;;  %v4896_v11 = vsub.s32 3, %v4761_v44 }
 0x693   : > { %v1499_v13 = vpop.xlane.xlu1 %1498 }
 0x694   : > { %v1502_v14 = vadd.f32 1e-05, %v1500_v12  ;;  %v1501_v16 = vmul.f32 0.03125, %v1499_v13  ;;  %v1549_v12 = vrot.slane %v4859_v49, %v4896_v11  ;;  %v4901_v13 = vsub.s32 4, %v4761_v44 }
 0x696   : > { %4512 = vrsqrt.f32 %v1502_v14  ;;  %v1503_v18 = vadd.f32 1e-05, %v1501_v16 }
 0x698   : > { %4514 = vrsqrt.f32 %v1503_v18 }
 0x6a0   : > { %v4513_v22 = vpop.eup %4512 }
 0x6a1   : > { %v1506_v23 = vmul.f32 %v4513_v22, %v1490_v4  ;;  %v3798_v4 = vcombine.high %v1562_v61, %v1570_v0  ;;  %v3803_v61 = vcombine.low %v1565_v48, %v1573_v50  ;;  %v3820_v0 = vcombine.high %v1581_v57, %v1589_v58 }
 0x6a2   : > { %v4515_v15 = vpop.eup %4514 }
 0x6a3   : > { %v1512_v24 = vmul.f32 %v1511_v21, %v1506_v23  ;;  %v1507_v25 = vmul.f32 %v4515_v15, %v1491_v6  ;;  %1965 = vmatprep.subr.bf16.mxu1 %v3798_v4  ;;  %v1577_v15 = vld [vmem:[%s4665_s24 + $0x90] sm:$0xff]  ;;  %v3821_v4 = vcombine.low %v1582_v59, %v1590_v60 }
 0x6a5   : > { %v1518_v26 = vadd.f32 %v1517_v3, %v1512_v24  ;;  %v1513_v27 = vmul.f32 %v1511_v21, %v1507_v25  ;;  %v1555_v21 = vrot.slane %v4859_v49, %v4901_v13  ;;  %v1585_v24 = vld [vmem:[%s4665_s24 + $0xd0] sm:$0xff]  ;;  %v1578_v25 = vld [vmem:[%s4665_s24 + $0x98] sm:$0xff]  ;;  %v1563_v49 = vld [vmem:[%s4665_s24 + $0x20] sm:$0xff] }
 0x6a7   : > { %v1520_v28 = vsel %vm451_vm2, %v1518_v26, 0.0  ;;  %v1519_v29 = vadd.f32 %v1517_v3, %v1513_v27 }
 0x6a8   : > { %1521 = vadd.xlane.f32.xlu0 %v1520_v28 }
 0x6a9   : > { %v1523_v30 = vsel %vm451_vm2, %v1519_v29, 0.0 }
 0x6aa   : > { %1524 = vadd.xlane.f32.xlu1 %v1523_v30  ;;  %v3812_v30 = vcombine.high %v1577_v15, %v1585_v24 }
 0x735   : > { %v1522_v31 = vpop.xlane.xlu0 %1521 }
 0x736   : > { %v1526_v32 = vmul.f32 0.03125, %v1522_v31 }
 0x737   : > { %v1525_v33 = vpop.xlane.xlu1 %1524 }
 0x738   : > { %v1528_v35 = vsub.f32 %v1518_v26, %v1526_v32  ;;  %v1527_v36 = vmul.f32 0.03125, %v1525_v33  ;;  %v1586_v26 = vld [vmem:[%s4665_s24 + $0xd8] sm:$0xff]  ;;  %v1571_v32 = vld [vmem:[%s4665_s24 + $0x60] sm:$0xff]  ;;  %v1564_v33 = vld [vmem:[%s4665_s24 + $0x28] sm:$0xff] }
 0x739   : > { %v3814_v31 = vcombine.high %v1578_v25, %v1586_v26  ;;  %v3799_v17 = vcombine.low %v1563_v49, %v1571_v32 }
 0x73a   : > { %v1529_v37 = vsub.f32 %v1519_v29, %v1527_v36  ;;  %v1530_v38 = vmul.f32 %v1528_v35, %v1528_v35  ;;  %v3811_v36 = vcombine.low %v1577_v15, %v1585_v24  ;;  %v4366_v15 = vld [vmem:[%s4671_s10 + $0x98] sm:$0xff]   ;;  %v4367_v24 = vld [vmem:[%s4671_s10 + $0x60] sm:$0xff]  }
 0x73c   : > { %v1532_v39 = vsel %vm451_vm2, %v1530_v38, 0.0  ;;  %v1531_v40 = vmul.f32 %v1529_v37, %v1529_v37  ;;  %v3800_v38 = vcombine.high %v1563_v49, %v1571_v32  ;;  %v4373_v49 = vld [vmem:[%s4671_s10 + $0x28] sm:$0xff]  }
 0x73d   : > { %1533 = vadd.xlane.f32.xlu0 %v1532_v39  ;;  %v4374_v32 = vld [vmem:[%s4671_s10 + $0xa8] sm:$0xff]  }
 0x73e   : > { %v1535_v41 = vsel %vm451_vm2, %v1531_v40, 0.0  ;;  %v1579_v40 = vld [vmem:[%s4665_s24 + $0xa0] sm:$0xff] }
 0x73f   : > { %1536 = vadd.xlane.f32.xlu1 %v1535_v41  ;;  %v1587_v41 = vld [vmem:[%s4665_s24 + $0xe0] sm:$0xff] }
 0x740   : > { %v3816_v46 = vcombine.high %v1579_v40, %v1587_v41  ;;  %v3815_v53 = vcombine.low %v1579_v40, %v1587_v41  ;;  %v4381_v40 = vld [vmem:[%s4671_s10 + $0x38] sm:$0xff]  }
 0x741   : > { %v4382_v41 = vld [vmem:[%s4671_s10 + $0xb8] sm:$0xff]  }
 0x7ca   : > { %v1534_v5 = vpop.xlane.xlu0 %1533 }
 0x7cb   : > { %v1538_v6 = vmul.f32 0.03125, %v1534_v5  ;;  %v4351_v5 = vld [vmem:[%s4671_s10 + $0x40] sm:$0xff]  }
 0x7cc   : > { %v1537_v7 = vpop.xlane.xlu1 %1536 }
 0x7cd   : > { %v1540_v8 = vadd.f32 1e-05, %v1538_v6  ;;  %v1539_v9 = vmul.f32 0.03125, %v1537_v7  ;;  %v4352_v6 = vld [vmem:[%s4671_s10 + $0xc0] sm:$0xff]  }
 0x7ce   : > { %v4353_v7 = vld [vmem:[%s4671_s10] sm:$0xff]  }
 0x7cf   : > { %4516 = vrsqrt.f32 %v1540_v8  ;;  %v1541_v10 = vadd.f32 1e-05, %v1539_v9  ;;  %v4354_v8 = vld [vmem:[%s4671_s10 + $0x80] sm:$0xff]   ;;  %v4355_v9 = vld [vmem:[%s4671_s10 + $0x48] sm:$0xff]  }
 0x7d1   : > { %4518 = vrsqrt.f32 %v1541_v10  ;;  %v4356_v10 = vld [vmem:[%s4671_s10 + $0xc8] sm:$0xff]  }
 0x7d9   : > { %v4517_v14 = vpop.eup %4516 }
 0x7da   : > { %v1544_v16 = vmul.f32 %v4517_v14, %v1528_v35  ;;  %v1572_v35 = vld [vmem:[%s4665_s24 + $0x68] sm:$0xff]  ;;  %v4359_v14 = vld [vmem:[%s4671_s10 + $0x50] sm:$0xff]  }
 0x7db   : > { %v4519_v18 = vpop.eup %4518  ;;  %v3802_v39 = vcombine.high %v1564_v33, %v1572_v35  ;;  %v3801_v45 = vcombine.low %v1564_v33, %v1572_v35  ;;  %v4375_v33 = vld [vmem:[%s4671_s10 + $0x70] sm:$0xff]  }
 0x7dc   : > { %v1550_v22 = vmul.f32 %v1549_v12, %v1544_v16  ;;  %v1545_v23 = vmul.f32 %v4519_v18, %v1529_v37  ;;  %v3813_v37 = vcombine.low %v1578_v25, %v1586_v26  ;;  %v4360_v16 = vld [vmem:[%s4671_s10 + $0xd0] sm:$0xff]   ;;  %v4368_v25 = vld [vmem:[%s4671_s10 + $0xe0] sm:$0xff]  }
 0x7dd   : > { %v4361_v18 = vld [vmem:[%s4671_s10 + $0x10] sm:$0xff]   ;;  %v4369_v26 = vld [vmem:[%s4671_s10 + $0x20] sm:$0xff]  }
 0x7de   : > { %v1551_v3 = vmul.f32 %v1549_v12, %v1545_v23  ;;  %v4909_v27 = vadd.f32 %v1555_v21, %v1550_v22  ;;  %v4358_v12 = vld [vmem:[%s4671_s10 + $0x88] sm:$0xff]   ;;  %v4363_v22 = vld [vmem:[%s4671_s10 + $0x58] sm:$0xff]   ;;  %v4376_v35 = vld [vmem:[%s4671_s10 + $0xf0] sm:$0xff]  }
 0x7df   : > { %v4364_v23 = vld [vmem:[%s4671_s10 + $0xd8] sm:$0xff]  }
 0x7e0   : > { %v4911_v28 = vadd.f32 %v1555_v21, %v1551_v3  ;;  %v4362_v21 = vld [vmem:[%s4671_s10 + $0x90] sm:$0xff]   ;;  %v4365_v3 = vld [vmem:[%s4671_s10 + $0x18] sm:$0xff]  }
 0x7e2   : > { %v4915_v29 = vpack.c.bf16 %v4911_v28, %v4909_v27 }
 0x7e4   : > { %3823 = vmatmul.mubr.msk.bf16.vlgmr.msra.gmra.mrb[36].mxu0 %vm451_vm2, %v4915_v29  ;;  %3824 = vmatmul.mubr.msk.bf16.vlgmr.msra.gmra.mrb[36].mxu1 %vm451_vm2, %v4915_v29 }
 0x7e5   : > { %1923 = vmatpush1.bf16.msra.mxu0 %v3795_v1  ;;  %1966 = vmatpush1.bf16.msra.mxu1 %v3797_v2  ;;  %v3822_v1 = vcombine.high %v1582_v59, %v1590_v60  ;;  %v3819_v2 = vcombine.low %v1581_v57, %v1589_v58 }
 0x7e6   : > { %1924 = vmatprep.subr.bf16.mxu0 %v3812_v30  ;;  %1967 = vmatprep.subr.bf16.mxu1 %v3814_v31  ;;  %v4371_v30 = vld [vmem:[%s4671_s10 + $0x68] sm:$0xff]  }
 0x7e7   : > { %1954 = vmatprep.mubr.bf16.mxu0 %v4581_v62  ;;  %1997 = vmatprep.mubr.bf16.mxu1 %v4581_v62  ;;  %v4372_v31 = vld [vmem:[%s4671_s10 + $0xe8] sm:$0xff]  }
 0x7e9   : > { %1925 = vmatpush1.bf16.msra.mxu0 %v3811_v36  ;;  %1968 = vmatpush1.bf16.msra.mxu1 %v3813_v37  ;;  %v4377_v36 = vld [vmem:[%s4671_s10 + $0x30] sm:$0xff]  }
 0x7ea   : > { %2008 = vmatprep.subr.bf16.mxu0 %v3800_v38  ;;  %2051 = vmatprep.subr.bf16.mxu1 %v3802_v39  ;;  %v4378_v37 = vld [vmem:[%s4671_s10 + $0xb0] sm:$0xff]   ;;  %v4379_v38 = vld [vmem:[%s4671_s10 + $0x78] sm:$0xff]  }
 0x7eb   : > { %v4380_v39 = vld [vmem:[%s4671_s10 + $0xf8] sm:$0xff]  }
 0x7ec   : > { %3825 = vmatmul.mubr.msk.bf16.vlgmr.msra.gmra.mrb[40].mxu0 %vm451_vm2, %v4915_v29  ;;  %3826 = vmatmul.mubr.msk.bf16.vlgmr.msra.gmra.mrb[40].mxu1 %vm451_vm2, %v4915_v29 }
 0x7ed   : > { %2009 = vmatpush1.bf16.msra.mxu0 %v3799_v17  ;;  %2052 = vmatpush1.bf16.msra.mxu1 %v3801_v45  ;;  %v4990_v17 = vsub.s32 6, %v4761_v44  ;;  %v4993_v45 = vld [vmem:[%s4660_s21 + $0x8] sm:$0xff] }
 0x7ee   : > { %2010 = vmatprep.subr.bf16.mxu0 %v3816_v46  ;;  %2053 = vmatprep.subr.bf16.mxu1 %v3818_v47  ;;  %v412_v47 = vld [vmem:[%s4660_s21] sm:$0xff]  ;;  %s3641_s21 = sshll.u32 %s4582_s17, 4  ;;  %s3642_s21 = int_to_ptr.vmem [resolvable:$true] %s3641_s21 }
 0x7ef   : > { %2040 = vmatprep.mubr.bf16.mxu0 %v4581_v62  ;;  %2083 = vmatprep.mubr.bf16.mxu1 %v4581_v62  ;;  %v4997_v46 = vrot.slane %v4993_v45, %v4990_v17  ;;  %v1596_v48 = vrot.slane %v412_v47, %v4856_v34  ;;  %v1604_v50 = vrot.slane %v412_v47, %v4871_v20  ;;  %s4526_s24 = scalar_lea.vmem %s3642_s21, 128  ;;  %p4533_p9 = scmp.lt.s32.totalorder %s3642_s21, %s3642_s21 }
 0x7f0   : > { %v1600_v51 = vrot.slane %v412_v47, %v4868_v19  ;;  %v1608_v52 = vrot.slane %v412_v47, %v4896_v11  ;;  %p4527_p6 = scmp.ne.s32.totalorder %s3642_s21, %s4526_s24  ;;  %p4534_p10 = scmp.lt.s32.totalorder %s4526_s24, %s4526_s24 }
 0x7f1   : > { %2011 = vmatpush1.bf16.msra.mxu0 %v3815_v53  ;;  %2054 = vmatpush1.bf16.msra.mxu1 %v3817_v54 }
 0x7f2   : > { %2094 = vmatprep.subr.bf16.mxu0 %v3804_v55  ;;  %2137 = vmatprep.subr.bf16.mxu1 %v3806_v56  ;;  %v5005_v55 = vsub.s32 5, %v4761_v44  ;;  %v5008_v56 = vsub.s32 7, %v4761_v44  ;;  %p4528_p7 = pnand %p4527_p6, %p4301_p5  ;;  %p4535_p11 = por %p4534_p10, %p4533_p9 }
 0x7f4   : > { %3827 = vmatmul.mubr.msk.bf16.vlgmr.msra.gmra.mrb[44].mxu0 %vm451_vm2, %v4915_v29  ;;  %3828 = vmatmul.mubr.msk.bf16.vlgmr.msra.gmra.mrb[44].mxu1 %vm451_vm2, %v4915_v29  ;;  %v1616_v44 = vrot.slane %v412_v47, %v5005_v55  ;;  %p4529_p8 = pneg %p4528_p7 }
 0x7f5   : > { %2095 = vmatpush1.bf16.msra.mxu0 %v3803_v61  ;;  %2138 = vmatpush1.bf16.msra.mxu1 %v3805_v63 }
 0x7f6   : > { %2096 = vmatprep.subr.bf16.mxu0 %v3820_v0  ;;  %2139 = vmatprep.subr.bf16.mxu1 %v3822_v1  ;;  %p4536_p12 = pnand %p4535_p11, %p4529_p8 }
 0x7f7   : > { %2126 = vmatprep.mubr.bf16.mxu0 %v4581_v62  ;;  %2169 = vmatprep.mubr.bf16.mxu1 %v4581_v62  ;;  %v4357_v62 = vld [vmem:[%s4671_s10 + $0x8] sm:$0xff]  }
 0x7f9   : > { %2097 = vmatpush1.bf16.msra.mxu0 %v3819_v2  ;;  %2140 = vmatpush1.bf16.msra.mxu1 %v3821_v4 }
 0x7fa   : > { %4009 = vmatprep.subr.bf16.mxu0 %v4351_v5  ;;  %4031 = vmatprep.subr.bf16.mxu1 %v4352_v6 }
 0x7fc   : > { %3829 = vmatmul.mubr.msk.bf16.vlgmr.msra.gmra.mrb[48].mxu0 %vm451_vm2, %v4915_v29  ;;  %3830 = vmatmul.mubr.msk.bf16.vlgmr.msra.gmra.mrb[48].mxu1 %vm451_vm2, %v4915_v29  ;;  %v4370_v29 = vld [vmem:[%s4671_s10 + $0xa0] sm:$0xff]  }
 0x7fd   : > { %4010 = vmatpush3.bf16.msra.mxu0 %v4353_v7  ;;  %4032 = vmatpush3.bf16.msra.mxu1 %v4354_v8  ;;  %v1612_v7 = vrot.slane %v412_v47, %v4901_v13  ;;  %v1620_v8 = vrot.slane %v412_v47, %v4990_v17 }
 0x7fe   : > { %4011 = vmatprep.subr.bf16.mxu0 %v4355_v9  ;;  %4033 = vmatprep.subr.bf16.mxu1 %v4356_v10 }
 0x801   : > { %4012 = vmatpush3.bf16.msra.mxu0 %v4357_v62  ;;  %4034 = vmatpush3.bf16.msra.mxu1 %v4358_v12  ;;  %v1624_v62 = vrot.slane %v412_v47, %v5008_v56  ;;  %v1636_v47 = vrot.slane %v4993_v45, %v4871_v20  ;;  %v1640_v20 = vrot.slane %v4993_v45, %v4896_v11 }
 0x802   : > { %4013 = vmatprep.subr.bf16.mxu0 %v4359_v14  ;;  %4035 = vmatprep.subr.bf16.mxu1 %v4360_v16 }
 0x805   : > { %4014 = vmatpush3.bf16.msra.mxu0 %v4361_v18  ;;  %4036 = vmatpush3.bf16.msra.mxu1 %v4362_v21 }
 0x806   : > { %4015 = vmatprep.subr.bf16.mxu0 %v4363_v22  ;;  %4037 = vmatprep.subr.bf16.mxu1 %v4364_v23 }
 0x809   : > { %4016 = vmatpush3.bf16.msra.mxu0 %v4365_v3  ;;  %4038 = vmatpush3.bf16.msra.mxu1 %v4366_v15 }
 0x80a   : > { %4017 = vmatprep.subr.bf16.mxu0 %v4367_v24  ;;  %4039 = vmatprep.subr.bf16.mxu1 %v4368_v25 }
 0x80d   : > { %4018 = vmatpush3.bf16.msra.mxu0 %v4369_v26  ;;  %4040 = vmatpush3.bf16.msra.mxu1 %v4370_v29 }
 0x80e   : > { %4019 = vmatprep.subr.bf16.mxu0 %v4371_v30  ;;  %4041 = vmatprep.subr.bf16.mxu1 %v4372_v31  ;;  %v4385_v31 = vld [vmem:[%s4671_s10 + $0x100] sm:$0xff]  }
 0x811   : > { %4020 = vmatpush3.bf16.msra.mxu0 %v4373_v49  ;;  %4042 = vmatpush3.bf16.msra.mxu1 %v4374_v32  ;;  %v4386_v49 = vld [vmem:[%s4671_s10 + $0x180] sm:$0xff]  }
 0x812   : > { %4021 = vmatprep.subr.bf16.mxu0 %v4375_v33  ;;  %4043 = vmatprep.subr.bf16.mxu1 %v4376_v35 }
 0x815   : > { %4022 = vmatpush3.bf16.msra.mxu0 %v4377_v36  ;;  %4044 = vmatpush3.bf16.msra.mxu1 %v4378_v37  ;;  %v4387_v37 = vld [vmem:[%s4671_s10 + $0x148] sm:$0xff]  }
 0x816   : > { %4023 = vmatprep.subr.bf16.mxu0 %v4379_v38  ;;  %4045 = vmatprep.subr.bf16.mxu1 %v4380_v39  ;;  %v4388_v38 = vld [vmem:[%s4671_s10 + $0x1c8] sm:$0xff]   ;;  %v1628_v39 = vrot.slane %v4993_v45, %v4856_v34  ;;  %v1632_v34 = vrot.slane %v4993_v45, %v4868_v19 }
 0x819   : > { %4024 = vmatpush3.bf16.msra.mxu0 %v4381_v40  ;;  %4046 = vmatpush3.bf16.msra.mxu1 %v4382_v41 }
 0x81a   : > { %4053 = vmatprep.subr.bf16.mxu0 %v4383_v42  ;;  %4075 = vmatprep.subr.bf16.mxu1 %v4384_v43 }
 0x8b7   : > { %v1870_v53 = vpop.f32.mrb[36].mxu0  ;;  %v1913_v54 = vpop.f32.mrb[36].mxu1 }
 0x8b8   : > { %v1871_v57 = vadd.f32 %v1870_v53, %v1596_v48  ;;  %v1914_v58 = vadd.f32 %v1913_v54, %v1604_v50  ;;  %v1872_v59 = vpop.f32.mrb[37].mxu0  ;;  %v1915_v60 = vpop.f32.mrb[37].mxu1 }
 0x8b9   : > { %v1873_v61 = vadd.f32 %v1872_v59, %v1600_v51  ;;  %v1916_v63 = vadd.f32 %v1915_v60, %v1608_v52  ;;  %v1874_v0 = vpop.f32.mrb[38].mxu0  ;;  %v1917_v1 = vpop.f32.mrb[38].mxu1 }
 0x8ba   : > { %v1875_v2 = vadd.f32 %v1874_v0, %v1596_v48  ;;  %v1918_v4 = vadd.f32 %v1917_v1, %v1604_v50  ;;  %v1876_v5 = vpop.f32.mrb[39].mxu0  ;;  %v1919_v6 = vpop.f32.mrb[39].mxu1  ;;  %v2180_v12 = vmax.f32 %v1871_v57, 0.0  ;;  %v2182_v14 = vmax.f32 %v1914_v58, 0.0  ;;  %v4389_v57 = vld [vmem:[%s4671_s10 + $0x108] sm:$0xff]   ;;  %v4391_v0 = vld [vmem:[%s4671_s10 + $0x150] sm:$0xff]  }
 0x8bb   : > { %v1877_v9 = vadd.f32 %v1876_v5, %v1600_v51  ;;  %v1920_v10 = vadd.f32 %v1919_v6, %v1608_v52  ;;  %v2181_v21 = vmax.f32 %v1873_v61, 0.0  ;;  %v2183_v22 = vmax.f32 %v1916_v63, 0.0  ;;  %v4390_v58 = vld [vmem:[%s4671_s10 + $0x188] sm:$0xff]   ;;  %v4392_v1 = vld [vmem:[%s4671_s10 + $0x1d0] sm:$0xff]  }
 0x8bc   : > { %v2196_v16 = vmax.f32 %v1875_v2, 0.0  ;;  %v2198_v18 = vmax.f32 %v1918_v4, 0.0 }
 0x8bd   : > { %v2197_v23 = vmax.f32 %v1877_v9, 0.0  ;;  %v2199_v3 = vmax.f32 %v1920_v10, 0.0 }
 0x8be   : > { %v2212_v15 = vpack.c.bf16 %v2196_v16, %v2180_v12  ;;  %v2214_v24 = vpack.c.bf16 %v2198_v18, %v2182_v14 }
 0x8bf   : > { %v2213_v25 = vpack.c.bf16 %v2197_v23, %v2181_v21  ;;  %v2215_v26 = vpack.c.bf16 %v2199_v3, %v2183_v22  ;;  %v1956_v29 = vpop.f32.mrb[40].mxu0  ;;  %v1999_v30 = vpop.f32.mrb[40].mxu1  ;;  %v4395_v21 = vld [vmem:[%s4671_s10 + $0x158] sm:$0xff]  }
 0x8c0   : > { %v1957_v32 = vadd.f32 %v1956_v29, %v1612_v7  ;;  %v2000_v33 = vadd.f32 %v1999_v30, %v1620_v8  ;;  %v1958_v35 = vpop.f32.mrb[41].mxu0  ;;  %v2001_v36 = vpop.f32.mrb[41].mxu1  ;;  %v4396_v22 = vld [vmem:[%s4671_s10 + $0x1d8] sm:$0xff]  }
 0x8c1   : > { %v1959_v40 = vadd.f32 %v1958_v35, %v1616_v44  ;;  %v2002_v41 = vadd.f32 %v2001_v36, %v1624_v62  ;;  %v1960_v42 = vpop.f32.mrb[42].mxu0  ;;  %v2003_v43 = vpop.f32.mrb[42].mxu1  ;;  %3288 = vmatprep.mubr.bf16.mxu0 %v2213_v25  ;;  %3329 = vmatprep.mubr.bf16.mxu1 %v2215_v26  ;;  %v4397_v35 = vld [vmem:[%s4671_s10 + $0x118] sm:$0xff]  }
 0x8c2   : > { %v1961_v48 = vadd.f32 %v1960_v42, %v1612_v7  ;;  %v2004_v50 = vadd.f32 %v2003_v43, %v1620_v8  ;;  %v1962_v51 = vpop.f32.mrb[43].mxu0  ;;  %v2005_v52 = vpop.f32.mrb[43].mxu1  ;;  %3289 = vmatmul.mubr.bf16.vlgmr.msra.gmra.mrb[52].mxu0 %v2212_v15  ;;  %3330 = vmatmul.mubr.bf16.vlgmr.msra.gmra.mrb[52].mxu1 %v2214_v24  ;;  %v2184_v59 = vmax.f32 %v1957_v32, 0.0  ;;  %v2186_v60 = vmax.f32 %v2000_v33, 0.0  ;;  %v4398_v36 = vld [vmem:[%s4671_s10 + $0x198] sm:$0xff]   ;;  %v4400_v42 = vld [vmem:[%s4671_s10 + $0x1e0] sm:$0xff]  }
 0x8c3   : > { %v1963_v53 = vadd.f32 %v1962_v51, %v1616_v44  ;;  %v2006_v54 = vadd.f32 %v2005_v52, %v1624_v62  ;;  %4054 = vmatpush3.bf16.msra.mxu0 %v4385_v31  ;;  %4076 = vmatpush3.bf16.msra.mxu1 %v4386_v49  ;;  %v2185_v19 = vmax.f32 %v1959_v40, 0.0  ;;  %v2187_v2 = vmax.f32 %v2002_v41, 0.0  ;;  %v4393_v44 = vld [vmem:[%s4671_s10 + $0x110] sm:$0xff]  }
 0x8c4   : > { %v2200_v61 = vmax.f32 %v1961_v48, 0.0  ;;  %v2202_v63 = vmax.f32 %v2004_v50, 0.0  ;;  %4055 = vmatprep.subr.bf16.mxu0 %v4387_v37  ;;  %4077 = vmatprep.subr.bf16.mxu1 %v4388_v38  ;;  %v4394_v62 = vld [vmem:[%s4671_s10 + $0x190] sm:$0xff]   ;;  %v1644_v31 = vrot.slane %v4993_v45, %v4901_v13  ;;  %v1648_v49 = vrot.slane %v4993_v45, %v5005_v55  ;;  %v4399_v13 = vld [vmem:[%s4671_s10 + $0x160] sm:$0xff]  }
 0x8c5   : > { %v2201_v4 = vmax.f32 %v1963_v53, 0.0  ;;  %v2203_v5 = vmax.f32 %v2006_v54, 0.0  ;;  %v1656_v37 = vrot.slane %v4993_v45, %v5008_v56 }
 0x8c6   : > { %v5030_v6 = vpack.c.bf16 %v2200_v61, %v2184_v59  ;;  %v5032_v7 = vpack.c.bf16 %v2202_v63, %v2186_v60  ;;  %v4403_v63 = vld [vmem:[%s4671_s10 + $0x168] sm:$0xff]  }
 0x8c7   : > { %v2217_v11 = vpack.c.bf16 %v2201_v4, %v2185_v19  ;;  %v2219_v8 = vpack.c.bf16 %v2203_v5, %v2187_v2  ;;  %4056 = vmatpush3.bf16.msra.mxu0 %v4389_v57  ;;  %4078 = vmatpush3.bf16.msra.mxu1 %v4390_v58  ;;  %v2042_v9 = vpop.f32.mrb[44].mxu0  ;;  %v2085_v10 = vpop.f32.mrb[44].mxu1  ;;  %v4401_v57 = vld [vmem:[%s4671_s10 + $0x120] sm:$0xff]  }
 0x8c8   : > { %v2043_v12 = vadd.f32 %v2042_v9, %v1628_v39  ;;  %v2086_v14 = vadd.f32 %v2085_v10, %v1636_v47  ;;  %v2044_v16 = vpop.f32.mrb[45].mxu0  ;;  %v2087_v18 = vpop.f32.mrb[45].mxu1  ;;  %4057 = vmatprep.subr.bf16.mxu0 %v4391_v0  ;;  %4079 = vmatprep.subr.bf16.mxu1 %v4392_v1  ;;  %v4402_v58 = vld [vmem:[%s4671_s10 + $0x1a0] sm:$0xff]   ;;  %v4404_v0 = vld [vmem:[%s4671_s10 + $0x1e8] sm:$0xff]  }
 0x8c9   : > { %v2045_v23 = vadd.f32 %v2044_v16, %v1632_v34  ;;  %v2088_v3 = vadd.f32 %v2087_v18, %v1640_v20  ;;  %v2046_v15 = vpop.f32.mrb[46].mxu0  ;;  %v2089_v24 = vpop.f32.mrb[46].mxu1  ;;  %3370 = vmatprep.mubr.bf16.mxu0 %v2217_v11  ;;  %3411 = vmatprep.mubr.bf16.mxu1 %v2219_v8 }
 0x8ca   : > { %v2047_v25 = vadd.f32 %v2046_v15, %v1628_v39  ;;  %v2090_v26 = vadd.f32 %v2089_v24, %v1636_v47  ;;  %v2048_v29 = vpop.f32.mrb[47].mxu0  ;;  %v2091_v30 = vpop.f32.mrb[47].mxu1  ;;  %v2188_v38 = vmax.f32 %v2043_v12, 0.0  ;;  %v2190_v39 = vmax.f32 %v2086_v14, 0.0  ;;  %v4406_v12 = vld [vmem:[%s4671_s10 + $0x1a8] sm:$0xff]  }
 0x8cb   : > { %v2049_v32 = vadd.f32 %v2048_v29, %v1632_v34  ;;  %v2092_v33 = vadd.f32 %v2091_v30, %v1640_v20  ;;  %4058 = vmatpush3.bf16.msra.mxu0 %v4393_v44  ;;  %4080 = vmatpush3.bf16.msra.mxu1 %v4394_v62  ;;  %v2189_v43 = vmax.f32 %v2045_v23, 0.0  ;;  %v2191_v47 = vmax.f32 %v2088_v3, 0.0  ;;  %v4405_v62 = vld [vmem:[%s4671_s10 + $0x128] sm:$0xff]  }
 0x8cc   : > { %v2204_v40 = vmax.f32 %v2047_v25, 0.0  ;;  %v2206_v41 = vmax.f32 %v2090_v26, 0.0  ;;  %4059 = vmatprep.subr.bf16.mxu0 %v4395_v21  ;;  %4081 = vmatprep.subr.bf16.mxu1 %v4396_v22  ;;  %v4407_v22 = vld [vmem:[%s4671_s10 + $0x170] sm:$0xff]  }
 0x8cd   : > { %v2205_v48 = vmax.f32 %v2049_v32, 0.0  ;;  %v2207_v50 = vmax.f32 %v2092_v33, 0.0  ;;  %v4411_v32 = vld [vmem:[%s4671_s10 + $0x178] sm:$0xff]  }
 0x8ce   : > { %v5048_v51 = vpack.c.bf16 %v2204_v40, %v2188_v38  ;;  %v5050_v52 = vpack.c.bf16 %v2206_v41, %v2190_v39  ;;  %v4412_v33 = vld [vmem:[%s4671_s10 + $0x1f8] sm:$0xff]   ;;  %v4416_v38 = vld [vmem:[%s4671_s10 + $0x2c0] sm:$0xff]   ;;  %v4419_v41 = vld [vmem:[%s4671_s10 + $0x248] sm:$0xff]  }
 0x8cf   : > { %v5052_v45 = vpack.c.bf16 %v2205_v48, %v2189_v43  ;;  %v5054_v34 = vpack.c.bf16 %v2207_v50, %v2191_v47  ;;  %4060 = vmatpush3.bf16.msra.mxu0 %v4397_v35  ;;  %4082 = vmatpush3.bf16.msra.mxu1 %v4398_v36  ;;  %v2128_v53 = vpop.f32.mrb[48].mxu0  ;;  %v2171_v54 = vpop.f32.mrb[48].mxu1  ;;  %v4413_v35 = vld [vmem:[%s4671_s10 + $0x138] sm:$0xff]   ;;  %v4417_v39 = vld [vmem:[%s4671_s10 + $0x200] sm:$0xff]   ;;  %v4422_v43 = vld [vmem:[%s4671_s10 + $0x288] sm:$0xff]  }
 0x8d0   : > { %v2129_v20 = vadd.f32 %v2128_v53, %v1644_v31  ;;  %v2172_v59 = vadd.f32 %v2171_v54, %v4997_v46  ;;  %v2130_v60 = vpop.f32.mrb[49].mxu0  ;;  %v2173_v61 = vpop.f32.mrb[49].mxu1  ;;  %4061 = vmatprep.subr.bf16.mxu0 %v4399_v13  ;;  %4083 = vmatprep.subr.bf16.mxu1 %v4400_v42  ;;  %v4414_v36 = vld [vmem:[%s4671_s10 + $0x1b8] sm:$0xff]   ;;  %v4418_v40 = vld [vmem:[%s4671_s10 + $0x280] sm:$0xff]   ;;  %v4420_v13 = vld [vmem:[%s4671_s10 + $0x2c8] sm:$0xff]  }
 0x8d1   : > { %v2131_v1 = vadd.f32 %v2130_v60, %v1648_v49  ;;  %v2174_v19 = vadd.f32 %v2173_v61, %v1656_v37  ;;  %v2132_v2 = vpop.f32.mrb[50].mxu0  ;;  %v2175_v4 = vpop.f32.mrb[50].mxu1  ;;  %v4421_v42 = vld [vmem:[%s4671_s10 + $0x208] sm:$0xff]   ;;  %v4423_v47 = vld [vmem:[%s4671_s10 + $0x250] sm:$0xff]   ;;  %v4427_v50 = vld [vmem:[%s4671_s10 + $0x258] sm:$0xff]  }
 0x8d2   : > { %v2133_v5 = vadd.f32 %v2132_v2, %v1644_v31  ;;  %v2176_v11 = vadd.f32 %v2175_v4, %v4997_v46  ;;  %v2134_v8 = vpop.f32.mrb[51].mxu0  ;;  %v2177_v9 = vpop.f32.mrb[51].mxu1  ;;  %v2192_v14 = vmax.f32 %v2129_v20, 0.0  ;;  %v2194_v16 = vmax.f32 %v2172_v59, 0.0  ;;  %v4408_v46 = vld [vmem:[%s4671_s10 + $0x1f0] sm:$0xff]   ;;  %v4430_v53 = vld [vmem:[%s4671_s10 + $0x298] sm:$0xff]  }
 0x8d3   : > { %v2135_v10 = vadd.f32 %v2134_v8, %v1648_v49  ;;  %v2178_v44 = vadd.f32 %v2177_v9, %v1656_v37  ;;  %4062 = vmatpush3.bf16.msra.mxu0 %v4401_v57  ;;  %4084 = vmatpush3.bf16.msra.mxu1 %v4402_v58  ;;  %v2193_v23 = vmax.f32 %v2131_v1, 0.0  ;;  %v2195_v3 = vmax.f32 %v2174_v19, 0.0  ;;  %v4409_v31 = vld [vmem:[%s4671_s10 + $0x130] sm:$0xff]   ;;  %v4415_v37 = vld [vmem:[%s4671_s10 + $0x240] sm:$0xff]   ;;  %v4435_v59 = vld [vmem:[%s4671_s10 + $0x268] sm:$0xff]  }
 0x8d4   : > { %v2208_v18 = vmax.f32 %v2133_v5, 0.0  ;;  %v2210_v21 = vmax.f32 %v2176_v11, 0.0  ;;  %4063 = vmatprep.subr.bf16.mxu0 %v4403_v63  ;;  %4085 = vmatprep.subr.bf16.mxu1 %v4404_v0  ;;  %v4410_v49 = vld [vmem:[%s4671_s10 + $0x1b0] sm:$0xff]   ;;  %v4431_v54 = vld [vmem:[%s4671_s10 + $0x260] sm:$0xff]   ;;  %v4436_v60 = vld [vmem:[%s4671_s10 + $0x2e8] sm:$0xff]  }
 0x8d5   : > { %v2209_v15 = vmax.f32 %v2135_v10, 0.0  ;;  %v2211_v24 = vmax.f32 %v2178_v44, 0.0  ;;  %v4426_v48 = vld [vmem:[%s4671_s10 + $0x290] sm:$0xff]   ;;  %v4432_v57 = vld [vmem:[%s4671_s10 + $0x2e0] sm:$0xff]   ;;  %v4437_v61 = vld [vmem:[%s4671_s10 + $0x228] sm:$0xff]  }
 0x8d6   : > { %v5066_v25 = vpack.c.bf16 %v2208_v18, %v2192_v14  ;;  %v5068_v26 = vpack.c.bf16 %v2210_v21, %v2194_v16  ;;  %v4433_v58 = vld [vmem:[%s4671_s10 + $0x220] sm:$0xff]   ;;  %v4438_v63 = vld [vmem:[%s4671_s10 + $0x2a8] sm:$0xff]   ;;  %v4439_v0 = vld [vmem:[%s4671_s10 + $0x270] sm:$0xff]  }
 0x8d7   : > { %v5070_v29 = vpack.c.bf16 %v2209_v15, %v2193_v23  ;;  %v5072_v30 = vpack.c.bf16 %v2211_v24, %v2195_v3  ;;  %4064 = vmatpush3.bf16.msra.mxu0 %v4405_v62  ;;  %4086 = vmatpush3.bf16.msra.mxu1 %v4406_v12  ;;  %v4434_v20 = vld [vmem:[%s4671_s10 + $0x2a0] sm:$0xff]   ;;  %v4440_v1 = vld [vmem:[%s4671_s10 + $0x2f0] sm:$0xff]   ;;  %v4443_v4 = vld [vmem:[%s4671_s10 + $0x278] sm:$0xff]  }
 0x8d8   : > { %4065 = vmatprep.subr.bf16.mxu0 %v4407_v22  ;;  %4087 = vmatprep.subr.bf16.mxu1 %v4408_v46  ;;  %v4441_v19 = vld [vmem:[%s4671_s10 + $0x230] sm:$0xff]   ;;  %v4444_v5 = vld [vmem:[%s4671_s10 + $0x2f8] sm:$0xff]   ;;  %v4447_v9 = vld [vmem:[%s4671_s10 + $0x340] sm:$0xff]  }
 0x8d9   : > { %v4442_v2 = vld [vmem:[%s4671_s10 + $0x2b0] sm:$0xff]   ;;  %v4445_v11 = vld [vmem:[%s4671_s10 + $0x238] sm:$0xff]   ;;  %v4448_v10 = vld [vmem:[%s4671_s10 + $0x3c0] sm:$0xff]  }
 0x8da   : > { %v4446_v8 = vld [vmem:[%s4671_s10 + $0x2b8] sm:$0xff]   ;;  %v4449_v44 = vld [vmem:[%s4671_s10 + $0x300] sm:$0xff]   ;;  %v4451_v12 = vld [vmem:[%s4671_s10 + $0x348] sm:$0xff]  }
 0x8db   : > { %4066 = vmatpush3.bf16.msra.mxu0 %v4409_v31  ;;  %4088 = vmatpush3.bf16.msra.mxu1 %v4410_v49  ;;  %v4450_v62 = vld [vmem:[%s4671_s10 + $0x380] sm:$0xff]   ;;  %v4452_v14 = vld [vmem:[%s4671_s10 + $0x3c8] sm:$0xff]   ;;  %v4455_v21 = vld [vmem:[%s4671_s10 + $0x350] sm:$0xff]  }
 0x8dc   : > { %4067 = vmatprep.subr.bf16.mxu0 %v4411_v32  ;;  %4089 = vmatprep.subr.bf16.mxu1 %v4412_v33  ;;  %v4453_v16 = vld [vmem:[%s4671_s10 + $0x308] sm:$0xff]   ;;  %v4458_v22 = vld [vmem:[%s4671_s10 + $0x390] sm:$0xff]   ;;  %v4459_v46 = vld [vmem:[%s4671_s10 + $0x358] sm:$0xff]  }
 0x8dd   : > { %v4454_v18 = vld [vmem:[%s4671_s10 + $0x388] sm:$0xff]   ;;  %v4460_v23 = vld [vmem:[%s4671_s10 + $0x3d8] sm:$0xff]   ;;  %v4463_v24 = vld [vmem:[%s4671_s10 + $0x360] sm:$0xff]  }
 0x8de   : > { %v4461_v3 = vld [vmem:[%s4671_s10 + $0x318] sm:$0xff]   ;;  %v4466_v31 = vld [vmem:[%s4671_s10 + $0x3a0] sm:$0xff]   ;;  %v4467_v49 = vld [vmem:[%s4671_s10 + $0x368] sm:$0xff]  }
 0x8df   : > { %4068 = vmatpush3.bf16.msra.mxu0 %v4413_v35  ;;  %4090 = vmatpush3.bf16.msra.mxu1 %v4414_v36  ;;  %v4462_v15 = vld [vmem:[%s4671_s10 + $0x398] sm:$0xff]   ;;  %v4468_v32 = vld [vmem:[%s4671_s10 + $0x3e8] sm:$0xff]   ;;  %v4471_v36 = vld [vmem:[%s4671_s10 + $0x370] sm:$0xff]  }
 0x8e0   : > { %4097 = vmatprep.subr.bf16.mxu0 %v4415_v37  ;;  %4119 = vmatprep.subr.bf16.mxu1 %v4416_v38  ;;  %v4469_v33 = vld [vmem:[%s4671_s10 + $0x328] sm:$0xff]   ;;  %v4472_v37 = vld [vmem:[%s4671_s10 + $0x3f0] sm:$0xff]  }
 0x8e1   : > { %v4470_v35 = vld [vmem:[%s4671_s10 + $0x3a8] sm:$0xff]   ;;  %v4473_v38 = vld [vmem:[%s4671_s10 + $0x330] sm:$0xff]  }
 0x8e2   : > { %3371 = vmatmul.mubr.bf16.vlgmr.msra.gmra.mrb[56].mxu0 %v5030_v6  ;;  %3412 = vmatmul.mubr.bf16.vlgmr.msra.gmra.mrb[56].mxu1 %v5032_v7  ;;  %v4424_v6 = vld [vmem:[%s4671_s10 + $0x2d0] sm:$0xff]  }
 0x8e3   : > { %4098 = vmatpush3.bf16.msra.mxu0 %v4417_v39  ;;  %3452 = vmatprep.mubr.bf16.mxu0 %v5052_v45  ;;  %v4425_v7 = vld [vmem:[%s4671_s10 + $0x210] sm:$0xff]   ;;  %v4428_v45 = vld [vmem:[%s4671_s10 + $0x2d8] sm:$0xff]  }
 0x8e4   : > { %4120 = vmatpush3.bf16.msra.mxu1 %v4418_v40  ;;  %3493 = vmatprep.mubr.bf16.mxu1 %v5054_v34  ;;  %v4429_v34 = vld [vmem:[%s4671_s10 + $0x218] sm:$0xff]   ;;  %v4474_v39 = vld [vmem:[%s4671_s10 + $0x3b0] sm:$0xff]  }
 0x8e5   : > { %4099 = vmatprep.subr.bf16.mxu0 %v4419_v41  ;;  %4121 = vmatprep.subr.bf16.mxu1 %v4420_v13  ;;  %v4475_v40 = vld [vmem:[%s4671_s10 + $0x378] sm:$0xff]  }
 0x8e6   : > { %v4476_v41 = vld [vmem:[%s4671_s10 + $0x3f8] sm:$0xff]  }
 0x8e7   : > { %4100 = vmatpush3.bf16.msra.mxu0 %v4421_v42  ;;  %v4477_v13 = vld [vmem:[%s4671_s10 + $0x338] sm:$0xff]  }
 0x8e8   : > { %4122 = vmatpush3.bf16.msra.mxu1 %v4422_v43  ;;  %4101 = vmatprep.subr.bf16.mxu0 %v4423_v47  ;;  %v4478_v42 = vld [vmem:[%s4671_s10 + $0x3b8] sm:$0xff]  }
 0x8e9   : > { %4123 = vmatprep.subr.bf16.mxu1 %v4424_v6  ;;  %v5155_v6 = vld [vmem:[%s4677_s16] sm:$0xff] }
 0x8eb   : > { %4102 = vmatpush3.bf16.msra.mxu0 %v4425_v7  ;;  %v2487_v7 = vrot.slane %v5155_v6, %v5005_v55 }
 0x8ec   : > { %4124 = vmatpush3.bf16.msra.mxu1 %v4426_v48  ;;  %4103 = vmatprep.subr.bf16.mxu0 %v4427_v50 }
 0x8ed   : > { %4125 = vmatprep.subr.bf16.mxu1 %v4428_v45 }
 0x8ef   : > { %4104 = vmatpush3.bf16.msra.mxu0 %v4429_v34 }
 0x8f0   : > { %4126 = vmatpush3.bf16.msra.mxu1 %v4430_v53  ;;  %4105 = vmatprep.subr.bf16.mxu0 %v4431_v54 }
 0x8f1   : > { %4127 = vmatprep.subr.bf16.mxu1 %v4432_v57 }
 0x8f3   : > { %4106 = vmatpush3.bf16.msra.mxu0 %v4433_v58 }
 0x8f4   : > { %4128 = vmatpush3.bf16.msra.mxu1 %v4434_v20  ;;  %4107 = vmatprep.subr.bf16.mxu0 %v4435_v59 }
 0x8f5   : > { %4129 = vmatprep.subr.bf16.mxu1 %v4436_v60 }
 0x8f7   : > { %4108 = vmatpush3.bf16.msra.mxu0 %v4437_v61 }
 0x8f8   : > { %4130 = vmatpush3.bf16.msra.mxu1 %v4438_v63  ;;  %4109 = vmatprep.subr.bf16.mxu0 %v4439_v0 }
 0x8f9   : > { %4131 = vmatprep.subr.bf16.mxu1 %v4440_v1 }
 0x8fb   : > { %4110 = vmatpush3.bf16.msra.mxu0 %v4441_v19 }
 0x8fc   : > { %4132 = vmatpush3.bf16.msra.mxu1 %v4442_v2  ;;  %4111 = vmatprep.subr.bf16.mxu0 %v4443_v4 }
 0x8fd   : > { %4133 = vmatprep.subr.bf16.mxu1 %v4444_v5 }
 0x8ff   : > { %4112 = vmatpush3.bf16.msra.mxu0 %v4445_v11 }
 0x900   : > { %4134 = vmatpush3.bf16.msra.mxu1 %v4446_v8  ;;  %4141 = vmatprep.subr.bf16.mxu0 %v4447_v9 }
 0x901   : > { %4163 = vmatprep.subr.bf16.mxu1 %v4448_v10 }
 0x902   : > { %3453 = vmatmul.mubr.bf16.vlgmr.msra.gmra.mrb[60].mxu0 %v5048_v51  ;;  %v4456_v51 = vld [vmem:[%s4671_s10 + $0x3d0] sm:$0xff]  }
 0x903   : > { %3494 = vmatmul.mubr.bf16.vlgmr.msra.gmra.mrb[60].mxu1 %v5050_v52  ;;  %4142 = vmatpush3.bf16.msra.mxu0 %v4449_v44  ;;  %v4457_v52 = vld [vmem:[%s4671_s10 + $0x310] sm:$0xff]  }
 0x904   : > { %3534 = vmatprep.mubr.bf16.mxu0 %v5070_v29  ;;  %4164 = vmatpush3.bf16.msra.mxu1 %v4450_v62  ;;  %v4464_v29 = vld [vmem:[%s4671_s10 + $0x3e0] sm:$0xff]  }
 0x905   : > { %3575 = vmatprep.mubr.bf16.mxu1 %v5072_v30  ;;  %4143 = vmatprep.subr.bf16.mxu0 %v4451_v12  ;;  %v4465_v30 = vld [vmem:[%s4671_s10 + $0x320] sm:$0xff]  }
 0x906   : > { %4165 = vmatprep.subr.bf16.mxu1 %v4452_v14 }
 0x907   : > { %4144 = vmatpush3.bf16.msra.mxu0 %v4453_v16 }
 0x908   : > { %4166 = vmatpush3.bf16.msra.mxu1 %v4454_v18  ;;  %4145 = vmatprep.subr.bf16.mxu0 %v4455_v21 }
 0x909   : > { %4167 = vmatprep.subr.bf16.mxu1 %v4456_v51 }
 0x90b   : > { %4146 = vmatpush3.bf16.msra.mxu0 %v4457_v52 }
 0x90c   : > { %4168 = vmatpush3.bf16.msra.mxu1 %v4458_v22  ;;  %4147 = vmatprep.subr.bf16.mxu0 %v4459_v46 }
 0x90d   : > { %4169 = vmatprep.subr.bf16.mxu1 %v4460_v23 }
 0x90f   : > { %4148 = vmatpush3.bf16.msra.mxu0 %v4461_v3 }
 0x910   : > { %4170 = vmatpush3.bf16.msra.mxu1 %v4462_v15  ;;  %4149 = vmatprep.subr.bf16.mxu0 %v4463_v24 }
 0x911   : > { %4171 = vmatprep.subr.bf16.mxu1 %v4464_v29 }
 0x913   : > { %4150 = vmatpush3.bf16.msra.mxu0 %v4465_v30 }
 0x914   : > { %4172 = vmatpush3.bf16.msra.mxu1 %v4466_v31  ;;  %4151 = vmatprep.subr.bf16.mxu0 %v4467_v49 }
 0x915   : > { %4173 = vmatprep.subr.bf16.mxu1 %v4468_v32 }
 0x917   : > { %4152 = vmatpush3.bf16.msra.mxu0 %v4469_v33 }
 0x918   : > { %4174 = vmatpush3.bf16.msra.mxu1 %v4470_v35  ;;  %4153 = vmatprep.subr.bf16.mxu0 %v4471_v36 }
 0x919   : > { %4175 = vmatprep.subr.bf16.mxu1 %v4472_v37 }
 0x91b   : > { %4154 = vmatpush3.bf16.msra.mxu0 %v4473_v38 }
 0x91c   : > { %4176 = vmatpush3.bf16.msra.mxu1 %v4474_v39  ;;  %4155 = vmatprep.subr.bf16.mxu0 %v4475_v40 }
 0x91d   : > { %4177 = vmatprep.subr.bf16.mxu1 %v4476_v41 }
 0x91f   : > { %4156 = vmatpush3.bf16.msra.mxu0 %v4477_v13 }
 0x920   : > { %4178 = vmatpush3.bf16.msra.mxu1 %v4478_v42 }
 0x922   : > { %3535 = vmatmul.mubr.bf16.vlgmr.msra.gmra.mrb[64].mxu0 %v5066_v25 }
 0x923   : > { %3576 = vmatmul.mubr.bf16.vlgmr.msra.gmra.mrb[64].mxu1 %v5068_v26 }
 0x995   : > { %v4025_v43 = vpop.f32.mrb[52].mxu0  ;;  %v4047_v47 = vpop.f32.mrb[52].mxu1 }
 0x996   : > { %v4026_v48 = vpop.f32.mrb[53].mxu0  ;;  %v4048_v50 = vpop.f32.mrb[53].mxu1 }
 0x997   : > { %v4027_v45 = vadd.f32 %v4026_v48, %v4025_v43  ;;  %v4049_v34 = vadd.f32 %v4048_v50, %v4047_v47  ;;  %v4028_v53 = vpop.f32.mrb[54].mxu0  ;;  %v4050_v54 = vpop.f32.mrb[54].mxu1 }
 0x998   : > { %v4029_v57 = vpop.f32.mrb[55].mxu0  ;;  %v4051_v58 = vpop.f32.mrb[55].mxu1 }
 0x999   : > { %v3291_v20 = vadd.f32 %v4027_v45, %v2487_v7  ;;  %v4030_v59 = vadd.f32 %v4029_v57, %v4028_v53  ;;  %v4052_v25 = vadd.f32 %v4051_v58, %v4050_v54 }
 0x99b   : > { %v3332_v60 = vadd.f32 %v4049_v34, %v3291_v20  ;;  %v3294_v26 = vadd.f32 %v4030_v59, %v2487_v7 }
 0x99d   : > { %v3335_v61 = vadd.f32 %v4052_v25, %v3294_v26 }
 0x9b5   : > { %v4069_v63 = vpop.f32.mrb[56].mxu0  ;;  %v4091_v0 = vpop.f32.mrb[56].mxu1 }
 0x9b6   : > { %v4070_v1 = vpop.f32.mrb[57].mxu0  ;;  %v4092_v19 = vpop.f32.mrb[57].mxu1 }
 0x9b7   : > { %v4071_v2 = vadd.f32 %v4070_v1, %v4069_v63  ;;  %v4093_v55 = vadd.f32 %v4092_v19, %v4091_v0  ;;  %v4072_v4 = vpop.f32.mrb[58].mxu0  ;;  %v4094_v5 = vpop.f32.mrb[58].mxu1 }
 0x9b8   : > { %v4073_v11 = vpop.f32.mrb[59].mxu0  ;;  %v4095_v8 = vpop.f32.mrb[59].mxu1 }
 0x9b9   : > { %v3373_v9 = vadd.f32 %v4071_v2, %v3332_v60  ;;  %v4074_v10 = vadd.f32 %v4073_v11, %v4072_v4  ;;  %v4096_v44 = vadd.f32 %v4095_v8, %v4094_v5  ;;  %v3615_v5 = vrot.slane %v5155_v6, %v4990_v17 }
 0x9ba   : > { %v3621_v8 = vrot.slane %v5155_v6, %v5008_v56 }
 0x9bb   : > { %v3414_v62 = vadd.f32 %v4093_v55, %v3373_v9  ;;  %v3376_v12 = vadd.f32 %v4074_v10, %v3335_v61 }
 0x9bd   : > { %v3417_v14 = vadd.f32 %v4096_v44, %v3376_v12 }
 0x9d5   : > { %v4113_v16 = vpop.f32.mrb[60].mxu0 }
 0x9d6   : > { %v4135_v18 = vpop.f32.mrb[60].mxu1  ;;  %v4114_v21 = vpop.f32.mrb[61].mxu0 }
 0x9d7   : > { %v4115_v51 = vadd.f32 %v4114_v21, %v4113_v16  ;;  %v4136_v52 = vpop.f32.mrb[61].mxu1  ;;  %v4116_v22 = vpop.f32.mrb[62].mxu0 }
 0x9d8   : > { %v4137_v46 = vadd.f32 %v4136_v52, %v4135_v18  ;;  %v4138_v23 = vpop.f32.mrb[62].mxu1  ;;  %v4117_v3 = vpop.f32.mrb[63].mxu0 }
 0x9d9   : > { %v3455_v15 = vadd.f32 %v4115_v51, %v3414_v62  ;;  %v4118_v24 = vadd.f32 %v4117_v3, %v4116_v22  ;;  %v4139_v29 = vpop.f32.mrb[63].mxu1 }
 0x9da   : > { %v4140_v30 = vadd.f32 %v4139_v29, %v4138_v23 }
 0x9db   : > { %v3496_v31 = vadd.f32 %v4137_v46, %v3455_v15  ;;  %v3458_v49 = vadd.f32 %v4118_v24, %v3417_v14 }
 0x9dd   : > { %v3499_v32 = vadd.f32 %v4140_v30, %v3458_v49 }
 0x9f5   : > { %v4157_v33 = vpop.f32.mrb[64].mxu0 }
 0x9f6   : > { %v4179_v35 = vpop.f32.mrb[64].mxu1  ;;  %v4158_v36 = vpop.f32.mrb[65].mxu0 }
 0x9f7   : > { %v4159_v37 = vadd.f32 %v4158_v36, %v4157_v33  ;;  %v4180_v38 = vpop.f32.mrb[65].mxu1  ;;  %v4160_v39 = vpop.f32.mrb[66].mxu0 }
 0x9f8   : > { %v4181_v40 = vadd.f32 %v4180_v38, %v4179_v35  ;;  %v4182_v41 = vpop.f32.mrb[66].mxu1  ;;  %v4161_v13 = vpop.f32.mrb[67].mxu0 }
 0x9f9   : > { %v3537_v42 = vadd.f32 %v4159_v37, %v3496_v31  ;;  %v4162_v43 = vadd.f32 %v4161_v13, %v4160_v39  ;;  %v4183_v47 = vpop.f32.mrb[67].mxu1 }
 0x9fa   : > { %v4184_v7 = vadd.f32 %v4183_v47, %v4182_v41 }
 0x9fb   : > { %v3578_v48 = vadd.f32 %v4181_v40, %v3537_v42  ;;  %v3540_v50 = vadd.f32 %v4162_v43, %v3499_v32 }
 0x9fd   : > { %v3581_v45 = vadd.f32 %v4184_v7, %v3540_v50  ;;  %v3584_v34 = vadd.f32 %v3578_v48, %v4909_v27 }
 0x9ff   : > { %v3586_v53 = vsel %vm451_vm2, %v3584_v34, 0.0  ;;  %v3585_v54 = vadd.f32 %v3581_v45, %v4911_v28 }
 0xa00   : > { %3587 = vadd.xlane.f32.xlu0 %v3586_v53 }
 0xa01   : > { %v3589_v57 = vsel %vm451_vm2, %v3585_v54, 0.0 }
 0xa02   : > { %3590 = vadd.xlane.f32.xlu1 %v3589_v57 }
 0xa8d   : > { %v3588_v58 = vpop.xlane.xlu0 %3587 }
 0xa8e   : > { %v3592_v20 = vmul.f32 0.03125, %v3588_v58 }
 0xa8f   : > { %v3591_v59 = vpop.xlane.xlu1 %3590 }
 0xa90   : > { %v3594_v25 = vsub.f32 %v3584_v34, %v3592_v20  ;;  %v3593_v60 = vmul.f32 0.03125, %v3591_v59 }
 0xa92   : > { %v3595_v26 = vsub.f32 %v3585_v54, %v3593_v60  ;;  %v3596_v61 = vmul.f32 %v3594_v25, %v3594_v25 }
 0xa94   : > { %v3598_v63 = vsel %vm451_vm2, %v3596_v61, 0.0  ;;  %v3597_v0 = vmul.f32 %v3595_v26, %v3595_v26 }
 0xa95   : > { %3599 = vadd.xlane.f32.xlu0 %v3598_v63 }
 0xa96   : > { %v3601_v27 = vsel %vm451_vm2, %v3597_v0, 0.0 }
 0xa97   : > { %3602 = vadd.xlane.f32.xlu1 %v3601_v27 }
 0xb22   : > { %v3600_v1 = vpop.xlane.xlu0 %3599 }
 0xb23   : > { %v3604_v28 = vmul.f32 0.03125, %v3600_v1 }
 0xb24   : > { %v3603_v19 = vpop.xlane.xlu1 %3602 }
 0xb25   : > { %v3606_v2 = vadd.f32 1e-05, %v3604_v28  ;;  %v3605_v55 = vmul.f32 0.03125, %v3603_v19 }
 0xb27   : > { %4520 = vrsqrt.f32 %v3606_v2  ;;  %v3607_v4 = vadd.f32 1e-05, %v3605_v55 }
 0xb29   : > { %4522 = vrsqrt.f32 %v3607_v4 }
 0xb31   : > { %v4521_v11 = vpop.eup %4520 }
 0xb32   : > { %v3610_v9 = vmul.f32 %v4521_v11, %v3594_v25 }
 0xb33   : > { %v4523_v10 = vpop.eup %4522 }
 0xb34   : > { %v3616_v44 = vmul.f32 %v3615_v5, %v3610_v9  ;;  %v3611_v62 = vmul.f32 %v4523_v10, %v3595_v26 }
 0xb36   : > { %v3617_v12 = vmul.f32 %v3615_v5, %v3611_v62  ;;  %v3622_v14 = vadd.f32 %v3621_v8, %v3616_v44 }
 0xb38   : > { %v3623_v16 = vadd.f32 %v3621_v8, %v3617_v12  ;;  %v3969_v18 = vpack.c.bf16 %v3622_v14, %v3622_v14 }
 0xb3a   : > { %v3970_v21 = vpack.c.bf16 %v3623_v16, %v3623_v16  ;;  %3633 = vst.msk [vmem:[#allocation2] sm:$0xf] %vm3632_vm8, %v3969_v18 }
 0xb3c   : > { %3634 = vst.msk [vmem:[#allocation2 + $0x4] sm:$0xf] %vm3632_vm8, %v3970_v21 }
 0xb3d   : > { %4539 = shalt.err (!%p4536_p12)
}
 0xb3e   : > { %s4540_s22 = scalar_lea.hbm %s5205_s8, 128 }
 0xb3f   : > { %p4541_p13 = scmp.ne.s32.totalorder %s5205_s8, %s4540_s22  ;;  %p4546_p2 = scmp.lt.u32.totalorder %s4540_s22, %s5205_s8 }
 0xb41   : > { %p4542_p0 = pnand %p4541_p13, %p4301_p5 }
 0xb43   : > { %p4543_p1 = pneg %p4542_p0 }
 0xb45   : > { %p4548_p3 = pnand %p4546_p2, %p4543_p1 }
 0xb47   : > { %4551 = shalt.err (!%p4548_p3)
}
 0xb48   : > { %s4583_s11 = smov 4  }
 0xb49   : > { %4298 = dma.vmem_to_hbm [thread:$0]  (%p4301_p5), %s3642_s21, 128, %s5205_s8, [#allocation3], %s4574_s15, %s4574_s15, %s4583_s11  }
 0xb4a   : > { %4557 = dma.done.wait (%p4301_p5), [#allocation3], 128  }
 0xb4b   : > { %4559 = vsyncadd (%p4301_p5), [#allocation3], 4294967168 }
 0xb4c PF: > { %s19_s27 = sadd.s32 1, %s4562_s27  }
 0xb4d   : > { %p16_p4 = scmp.ge.s32.totalorder %s19_s27, 4  }
 0xb4f   :  { %18 = sbr.rel (!%p16_p4) target bundleno = 1 (0x1), region = 101 }
 0xb56   :  { %3657 = vsyncpa [#allocation3], 1 }
 0xb57   :  { %3659 = vsyncpa [#allocation3 + $0x1], 1 }

</bundles_post_ra>
